<compile_context>
chip_gen: v7x
topology: tpu7x:2x2x1
jax: 0.10.0
libtpu: 0.0.40
codegen_flags: <defaults>
</compile_context>

<pallas_src>
import functools

import jax
import jax.numpy as jnp
from jax.experimental import pallas as pl
from jax.experimental.pallas import tpu as pltpu


# ------------------------------ fused kernel --------------------------------

def _mtgnn_fused_kernel(x_ref, adjb_ref, ws_ref, bs_ref,
                        wk1_ref, b11_ref, w21_ref, b21_ref,
                        wk2_ref, b12_ref, w22_ref, b22_ref,
                        wt1_ref, bt1_ref, wt2_ref, bt2_ref,
                        we1_ref, be1_ref, we2_ref, be2_ref,
                        o_ref, hpad_ref, *, T, N, NBH, gdep, alpha):
    TN = T * N
    f32 = jnp.float32
    bf16 = jnp.bfloat16

    # ---- start_conv: Conv2d(Cin, H, 1x1) == per-(node,time) linear ----
    x = x_ref[0]                                              # (TN, nb*Cin) bf16
    h = jnp.dot(x, ws_ref[...], preferred_element_type=f32) + bs_ref[...]

    adjb = adjb_ref[...]                          # (TN, TN) bf16 = kron(I_T, A)

    # ---- MixProp x2 (nconv + first MLP linear pre-folded into wk) ----
    # Hop recursion state stays f32; MXU operands are bf16.
    # TODO(synk): nn.Dropout inside the MixProp MLP is identity at inference.
    def mixprop(h_in, wk_ref, b1, w2_ref, b2):
        hops = [h_in]
        a = h_in
        for _ in range(gdep):
            a = alpha * h_in + (1.0 - alpha) * jnp.dot(
                adjb, a.astype(bf16), preferred_element_type=f32)
            hops.append(a)
        # one stacked channel matmul instead of gdep+1 narrow ones
        cat = jnp.concatenate([t.astype(bf16) for t in hops], axis=1)
        h1 = jnp.maximum(
            jnp.dot(cat, wk_ref[...], preferred_element_type=f32) + b1, 0.0)
        return jnp.dot(h1.astype(bf16), w2_ref[...],
                       preferred_element_type=f32) + b2

    h = mixprop(h, wk1_ref, b11_ref[...], w21_ref, b21_ref[...])
    h = mixprop(h, wk2_ref, b12_ref[...], w22_ref, b22_ref[...])

    # ---- temporal convs: Conv2d(H, H, (1,3), padding=(0,1)) over time ----
    # zero the time borders of the bf16 VMEM pad buffer (cheap; done per step
    # on purpose -- do NOT guard with program_id==0 in case of core sharding).
    hpad_ref[0:N, :] = jnp.zeros((N, NBH), bf16)
    hpad_ref[(T + 1) * N:(T + 2) * N, :] = jnp.zeros((N, NBH), bf16)

    def tconv(h_in, wt_ref, bt, relu):
        hb = h_in.astype(bf16)
        hpad_ref[N:N + TN, :] = hb
        # fuse the three taps into one matmul: LHS = [h_{t-1} | h_t | h_{t+1}]
        taps = jnp.concatenate(
            [hpad_ref[0:TN, :], hb, hpad_ref[2 * N:2 * N + TN, :]], axis=1)
        acc = jnp.dot(taps, wt_ref[...], preferred_element_type=f32) + bt
        if relu:
            acc = jnp.maximum(acc, 0.0)
        return acc

    h = tconv(h, wt1_ref, bt1_ref[...], relu=True)
    h = tconv(h, wt2_ref, bt2_ref[...], relu=False)

    # ---- end_conv (1x1 -> ReLU -> 1x1) fused with the mean over time ----
    g = jnp.maximum(jnp.dot(h.astype(bf16), we1_ref[...],
                            preferred_element_type=f32) + be1_ref[...], 0.0)
    # balanced tree reduction over time; 1/T is folded into we2 in the wrapper.
    parts = [g[t * N:(t + 1) * N] for t in range(T)]
    while len(parts) > 1:
        nxt = [parts[i] + parts[i + 1] for i in range(0, len(parts) - 1, 2)]
        if len(parts) % 2:
            nxt.append(parts[-1])
        parts = nxt
    gs = parts[0]                                             # (N, nb*H) f32
    o_ref[0] = (jnp.dot(gs.astype(bf16), we2_ref[...],
                        preferred_element_type=f32) + be2_ref[...])


# --------------------------------- wrapper -----------------------------------

def mtgnn_forward(x, adj, p, *, hidden_dim, gcn_depth, alpha):
    # x: (B, T, N, input_dim), adj: (N, N)  ->  (B, N, horizon)
    B, T, N, Cin = x.shape
    H = hidden_dim
    P = p["we2"].shape[-1]
    TN = T * N
    f32, bf16 = jnp.float32, jnp.bfloat16

    # ---- lane-pack the batch: nb batch elements share the 128-lane axis ----
    nb = max(1, min(B, 128 // max(H, 1)))
    while B % nb:
        nb -= 1
    G = B // nb
    NBH = nb * H

    eye_nb = jnp.eye(nb, dtype=f32)

    def bd(w):                      # block-diag lift kron(I_nb, w), bf16
        return jnp.kron(eye_nb, w.astype(f32)).astype(bf16)

    def bd_stack(ws):               # (K, A, C) -> (K*nb*A, nb*C), bf16
        return jnp.concatenate([bd(ws[k]) for k in range(ws.shape[0])], axis=0)

    def tile_b(b):                  # (1, D) -> (1, nb*D), f32 (added to f32 acc)
        return jnp.tile(b.astype(f32), (1, nb))

    # adj normalization: adj = (adj + I) row-normalized, lifted to the
    # flattened (t, n) row space so each MixProp hop is ONE matmul.
    adjn = adj + jnp.eye(N, dtype=adj.dtype)
    adjn = adjn / jnp.sum(adjn, axis=1, keepdims=True)
    adjb = jnp.kron(jnp.eye(T, dtype=f32), adjn.astype(f32)).astype(bf16)

    # Fold MixProp's nconv and the first MLP linear (both linear, adjacent):
    #   sum_k (a_k@wn + bn)@w1[k] == sum_k a_k@(wn@w1[k]) + bn@(sum_k w1[k]).
    def fold(gi):
        wn, bn = p[f"g{gi}_wn"], p[f"g{gi}_bn"]
        w1, b1 = p[f"g{gi}_w1"], p[f"g{gi}_b1"]
        wk = jnp.einsum("ij,kjl->kil", wn, w1)               # (gdep+1, H, H)
        b1f = jnp.dot(bn, jnp.sum(w1, axis=0)) + b1          # (1, H)
        return bd_stack(wk), tile_b(b1f)

    wk1, b11 = fold(1)
    wk2, b12 = fold(2)

    # lane-pack x: (B, T, N, Cin) -> (G, T*N, nb*Cin), bf16 for the MXU.
    xp = (x.reshape(G, nb, TN, Cin).transpose(0, 2, 1, 3)
            .reshape(G, TN, nb * Cin).astype(bf16))

    ws_bd, bs_t = bd(p["w_start"]), tile_b(p["b_start"])
    w21_bd, b21_t = bd(p["g1_w2"]), tile_b(p["g1_b2"])
    w22_bd, b22_t = bd(p["g2_w2"]), tile_b(p["g2_b2"])
    wt1_s, bt1_t = bd_stack(p["wt1"]), tile_b(p["bt1"])
    wt2_s, bt2_t = bd_stack(p["wt2"]), tile_b(p["bt2"])
    we1_bd, be1_t = bd(p["we1"]), tile_b(p["be1"])
    # mean over time commutes with the final (linear) 1x1 conv: fold 1/T here.
    we2_bd, be2_t = bd(p["we2"] / float(T)), tile_b(p["be2"])

    kern = functools.partial(_mtgnn_fused_kernel, T=T, N=N, NBH=NBH,
                             gdep=gcn_depth, alpha=float(alpha))

    def full(shape):
        zeros = (0,) * len(shape)
        return pl.BlockSpec(shape, lambda g: zeros)

    out = pl.pallas_call(
        kern,
        out_shape=jax.ShapeDtypeStruct((G, N, nb * P), jnp.float32),
        grid=(G,),
        in_specs=[
            pl.BlockSpec((1, TN, nb * Cin), lambda g: (g, 0, 0)),   # x (packed)
            full((TN, TN)),                                         # adj (kron)
            full((nb * Cin, NBH)), full((1, NBH)),                  # start_conv
            full(((gcn_depth + 1) * NBH, NBH)), full((1, NBH)),     # gconv1
            full((NBH, NBH)), full((1, NBH)),
            full(((gcn_depth + 1) * NBH, NBH)), full((1, NBH)),     # gconv2
            full((NBH, NBH)), full((1, NBH)),
            full((3 * NBH, NBH)), full((1, NBH)),                   # tconv1
            full((3 * NBH, NBH)), full((1, NBH)),                   # tconv2
            full((NBH, NBH)), full((1, NBH)),                       # end 1x1
            full((NBH, nb * P)), full((1, nb * P)),                 # end 1x1
        ],
        out_specs=pl.BlockSpec((1, N, nb * P), lambda g: (g, 0, 0)),
        scratch_shapes=[pltpu.VMEM(((T + 2) * N, NBH), jnp.bfloat16)],
        compiler_params=pltpu.CompilerParams(
            dimension_semantics=("parallel",)),
    )(xp, adjb, ws_bd, bs_t,
      wk1, b11, w21_bd, b21_t,
      wk2, b12, w22_bd, b22_t,
      wt1_s, bt1_t, wt2_s, bt2_t,
      we1_bd, be1_t, we2_bd, be2_t)

    # unpack lanes back onto the batch axis (tiny wrapper-side plumbing).
    out = out.reshape(G, N, nb, P).transpose(0, 2, 1, 3).reshape(B, N, P)
    return out


# ------------------------------ parameter init -------------------------------

def init_params(key, input_dim, hidden_dim, horizon, gcn_depth):
    H = hidden_dim
    keys = jax.random.split(key, 22)
    scale = 0.1

    def rnd(k, shape):
        return scale * jax.random.normal(k, shape, dtype=jnp.float32)

    p = {}
    p["w_start"] = rnd(keys[0], (input_dim, H))
    p["b_start"] = rnd(keys[1], (1, H))
    for gi in (1, 2):
        off = 2 + (gi - 1) * 6
        p[f"g{gi}_wn"] = rnd(keys[off + 0], (H, H))
        p[f"g{gi}_bn"] = rnd(keys[off + 1], (1, H))
        p[f"g{gi}_w1"] = rnd(keys[off + 2], (gcn_depth + 1, H, H))
        p[f"g{gi}_b1"] = rnd(keys[off + 3], (1, H))
        p[f"g{gi}_w2"] = rnd(keys[off + 4], (H, H))
        p[f"g{gi}_b2"] = rnd(keys[off + 5], (1, H))
    p["wt1"] = rnd(keys[14], (3, H, H))
    p["bt1"] = rnd(keys[15], (1, H))
    p["wt2"] = rnd(keys[16], (3, H, H))
    p["bt2"] = rnd(keys[17], (1, H))
    p["we1"] = rnd(keys[18], (H, H))
    p["be1"] = rnd(keys[19], (1, H))
    p["we2"] = rnd(keys[20], (H, horizon))
    p["be2"] = rnd(keys[21], (1, horizon))
    return p


if __name__ == "__main__":
    B, T, N = 2, 8, 16
    input_dim, hidden_dim, horizon = 4, 32, 4
    gcn_depth, alpha = 2, 0.05

    key = jax.random.PRNGKey(0)
    kx, kadj, kp = jax.random.split(key, 3)
    x = jax.random.normal(kx, (B, T, N, input_dim), dtype=jnp.float32)
    adj = jax.random.uniform(kadj, (N, N), dtype=jnp.float32)
    params = init_params(kp, input_dim, hidden_dim, horizon, gcn_depth)

    fwd = jax.jit(functools.partial(mtgnn_forward, hidden_dim=hidden_dim,
                                    gcn_depth=gcn_depth, alpha=alpha))
    out = fwd(x, adj, params)
    jax.block_until_ready(out)
    assert out.shape == (B, N, horizon), out.shape
    assert bool(jnp.all(jnp.isfinite(out)))
    print("KERNEL_OK")
</pallas_src>

<mosaic_0001>
module attributes {stable_mosaic.version = 11 : i64} {
  func.func @_mtgnn_fused_kernel(%arg0: i32, %arg1: memref<1x128x8xbf16, #tpu.memory_space<vmem>>, %arg2: memref<128x128xbf16, #tpu.memory_space<vmem>>, %arg3: memref<8x64xbf16, #tpu.memory_space<vmem>>, %arg4: memref<1x64xf32, #tpu.memory_space<vmem>>, %arg5: memref<192x64xbf16, #tpu.memory_space<vmem>>, %arg6: memref<1x64xf32, #tpu.memory_space<vmem>>, %arg7: memref<64x64xbf16, #tpu.memory_space<vmem>>, %arg8: memref<1x64xf32, #tpu.memory_space<vmem>>, %arg9: memref<192x64xbf16, #tpu.memory_space<vmem>>, %arg10: memref<1x64xf32, #tpu.memory_space<vmem>>, %arg11: memref<64x64xbf16, #tpu.memory_space<vmem>>, %arg12: memref<1x64xf32, #tpu.memory_space<vmem>>, %arg13: memref<192x64xbf16, #tpu.memory_space<vmem>>, %arg14: memref<1x64xf32, #tpu.memory_space<vmem>>, %arg15: memref<192x64xbf16, #tpu.memory_space<vmem>>, %arg16: memref<1x64xf32, #tpu.memory_space<vmem>>, %arg17: memref<64x64xbf16, #tpu.memory_space<vmem>>, %arg18: memref<1x64xf32, #tpu.memory_space<vmem>>, %arg19: memref<64x8xbf16, #tpu.memory_space<vmem>>, %arg20: memref<1x8xf32, #tpu.memory_space<vmem>>, %arg21: memref<1x16x8xf32, #tpu.memory_space<vmem>>, %arg22: memref<160x64xbf16, #tpu.memory_space<vmem>>) attributes {dimension_semantics = [#tpu.dimension_semantics<parallel>], iteration_bounds = array<i64: 1>, scalar_prefetch = 0 : i64, scratch_operands = 1 : i64, tpu.core_type = #tpu.core_type<tc>, window_params = [{transform_indices = @transform_0, window_bounds = array<i64: 1, 128, 8>}, {pipeline_mode = #tpu.pipeline_mode<synchronous>, transform_indices = @transform_1, window_bounds = array<i64: 128, 128>}, {pipeline_mode = #tpu.pipeline_mode<synchronous>, transform_indices = @transform_2, window_bounds = array<i64: 8, 64>}, {pipeline_mode = #tpu.pipeline_mode<synchronous>, transform_indices = @transform_3, window_bounds = array<i64: 1, 64>}, {pipeline_mode = #tpu.pipeline_mode<synchronous>, transform_indices = @transform_4, window_bounds = array<i64: 192, 64>}, {pipeline_mode = #tpu.pipeline_mode<synchronous>, transform_indices = @transform_5, window_bounds = array<i64: 1, 64>}, {pipeline_mode = #tpu.pipeline_mode<synchronous>, transform_indices = @transform_6, window_bounds = array<i64: 64, 64>}, {pipeline_mode = #tpu.pipeline_mode<synchronous>, transform_indices = @transform_7, window_bounds = array<i64: 1, 64>}, {pipeline_mode = #tpu.pipeline_mode<synchronous>, transform_indices = @transform_8, window_bounds = array<i64: 192, 64>}, {pipeline_mode = #tpu.pipeline_mode<synchronous>, transform_indices = @transform_9, window_bounds = array<i64: 1, 64>}, {pipeline_mode = #tpu.pipeline_mode<synchronous>, transform_indices = @transform_10, window_bounds = array<i64: 64, 64>}, {pipeline_mode = #tpu.pipeline_mode<synchronous>, transform_indices = @transform_11, window_bounds = array<i64: 1, 64>}, {pipeline_mode = #tpu.pipeline_mode<synchronous>, transform_indices = @transform_12, window_bounds = array<i64: 192, 64>}, {pipeline_mode = #tpu.pipeline_mode<synchronous>, transform_indices = @transform_13, window_bounds = array<i64: 1, 64>}, {pipeline_mode = #tpu.pipeline_mode<synchronous>, transform_indices = @transform_14, window_bounds = array<i64: 192, 64>}, {pipeline_mode = #tpu.pipeline_mode<synchronous>, transform_indices = @transform_15, window_bounds = array<i64: 1, 64>}, {pipeline_mode = #tpu.pipeline_mode<synchronous>, transform_indices = @transform_16, window_bounds = array<i64: 64, 64>}, {pipeline_mode = #tpu.pipeline_mode<synchronous>, transform_indices = @transform_17, window_bounds = array<i64: 1, 64>}, {pipeline_mode = #tpu.pipeline_mode<synchronous>, transform_indices = @transform_18, window_bounds = array<i64: 64, 8>}, {pipeline_mode = #tpu.pipeline_mode<synchronous>, transform_indices = @transform_19, window_bounds = array<i64: 1, 8>}, {transform_indices = @transform_20, window_bounds = array<i64: 1, 16, 8>}]} {
    %c0 = arith.constant 0 : index
    %c0_0 = arith.constant 0 : index
    %c0_1 = arith.constant 0 : index
    %0 = vector.load %arg1[%c0, %c0_0, %c0_1] : memref<1x128x8xbf16, #tpu.memory_space<vmem>>, vector<1x128x8xbf16>
    %1 = vector.shape_cast %0 : vector<1x128x8xbf16> to vector<128x8xbf16>
    %c0_2 = arith.constant 0 : index
    %c0_3 = arith.constant 0 : index
    %2 = vector.load %arg3[%c0_2, %c0_3] : memref<8x64xbf16, #tpu.memory_space<vmem>>, vector<8x64xbf16>
    %cst = arith.constant dense<0.000000e+00> : vector<128x64xf32>
    %3 = tpu.matmul %1, %2, %cst {dimension_numbers = #tpu.dot_dimension_numbers<[1], [0], [0], [1], [0, 0, 1, 1], [], []>} : vector<128x8xbf16>, vector<8x64xbf16>, vector<128x64xf32> -> vector<128x64xf32>
    %c0_4 = arith.constant 0 : index
    %c0_5 = arith.constant 0 : index
    %4 = vector.load %arg4[%c0_4, %c0_5] : memref<1x64xf32, #tpu.memory_space<vmem>>, vector<1x64xf32>
    %5 = vector.broadcast %4 : vector<1x64xf32> to vector<128x64xf32>
    %6 = arith.addf %3, %5 : vector<128x64xf32>
    %c0_6 = arith.constant 0 : index
    %c0_7 = arith.constant 0 : index
    %7 = vector.load %arg2[%c0_6, %c0_7] : memref<128x128xbf16, #tpu.memory_space<vmem>>, vector<128x128xbf16>
    %c0_8 = arith.constant 0 : index
    %c0_9 = arith.constant 0 : index
    %8 = vector.load %arg6[%c0_8, %c0_9] : memref<1x64xf32, #tpu.memory_space<vmem>>, vector<1x64xf32>
    %c0_10 = arith.constant 0 : index
    %c0_11 = arith.constant 0 : index
    %9 = vector.load %arg8[%c0_10, %c0_11] : memref<1x64xf32, #tpu.memory_space<vmem>>, vector<1x64xf32>
    %cst_12 = arith.constant 5.000000e-02 : f32
    %10 = vector.broadcast %cst_12 : f32 to vector<128x64xf32>
    %11 = arith.mulf %10, %6 : vector<128x64xf32>
    %12 = arith.truncf %6 : vector<128x64xf32> to vector<128x64xbf16>
    %cst_13 = arith.constant dense<0.000000e+00> : vector<128x64xf32>
    %13 = tpu.matmul %7, %12, %cst_13 {dimension_numbers = #tpu.dot_dimension_numbers<[1], [0], [0], [1], [0, 0, 1, 1], [], []>} : vector<128x128xbf16>, vector<128x64xbf16>, vector<128x64xf32> -> vector<128x64xf32>
    %cst_14 = arith.constant 0.949999988 : f32
    %14 = vector.broadcast %cst_14 : f32 to vector<128x64xf32>
    %15 = arith.mulf %14, %13 : vector<128x64xf32>
    %16 = arith.addf %11, %15 : vector<128x64xf32>
    %cst_15 = arith.constant 5.000000e-02 : f32
    %17 = vector.broadcast %cst_15 : f32 to vector<128x64xf32>
    %18 = arith.mulf %17, %6 : vector<128x64xf32>
    %19 = arith.truncf %16 : vector<128x64xf32> to vector<128x64xbf16>
    %cst_16 = arith.constant dense<0.000000e+00> : vector<128x64xf32>
    %20 = tpu.matmul %7, %19, %cst_16 {dimension_numbers = #tpu.dot_dimension_numbers<[1], [0], [0], [1], [0, 0, 1, 1], [], []>} : vector<128x128xbf16>, vector<128x64xbf16>, vector<128x64xf32> -> vector<128x64xf32>
    %cst_17 = arith.constant 0.949999988 : f32
    %21 = vector.broadcast %cst_17 : f32 to vector<128x64xf32>
    %22 = arith.mulf %21, %20 : vector<128x64xf32>
    %23 = arith.addf %18, %22 : vector<128x64xf32>
    %24 = arith.truncf %6 : vector<128x64xf32> to vector<128x64xbf16>
    %25 = arith.truncf %16 : vector<128x64xf32> to vector<128x64xbf16>
    %26 = arith.truncf %23 : vector<128x64xf32> to vector<128x64xbf16>
    %27 = tpu.concatenate %24, %25, %26 in 1 : vector<128x64xbf16>, vector<128x64xbf16>, vector<128x64xbf16> -> vector<128x192xbf16>
    %c0_18 = arith.constant 0 : index
    %c0_19 = arith.constant 0 : index
    %28 = vector.load %arg5[%c0_18, %c0_19] : memref<192x64xbf16, #tpu.memory_space<vmem>>, vector<192x64xbf16>
    %cst_20 = arith.constant dense<0.000000e+00> : vector<128x64xf32>
    %29 = tpu.matmul %27, %28, %cst_20 {dimension_numbers = #tpu.dot_dimension_numbers<[1], [0], [0], [1], [0, 0, 1, 1], [], []>} : vector<128x192xbf16>, vector<192x64xbf16>, vector<128x64xf32> -> vector<128x64xf32>
    %30 = vector.broadcast %8 : vector<1x64xf32> to vector<128x64xf32>
    %31 = arith.addf %29, %30 : vector<128x64xf32>
    %cst_21 = arith.constant 0.000000e+00 : f32
    %32 = vector.broadcast %cst_21 : f32 to vector<128x64xf32>
    %33 = arith.maximumf %31, %32 : vector<128x64xf32>
    %34 = arith.truncf %33 : vector<128x64xf32> to vector<128x64xbf16>
    %c0_22 = arith.constant 0 : index
    %c0_23 = arith.constant 0 : index
    %35 = vector.load %arg7[%c0_22, %c0_23] : memref<64x64xbf16, #tpu.memory_space<vmem>>, vector<64x64xbf16>
    %cst_24 = arith.constant dense<0.000000e+00> : vector<128x64xf32>
    %36 = tpu.matmul %34, %35, %cst_24 {dimension_numbers = #tpu.dot_dimension_numbers<[1], [0], [0], [1], [0, 0, 1, 1], [], []>} : vector<128x64xbf16>, vector<64x64xbf16>, vector<128x64xf32> -> vector<128x64xf32>
    %37 = vector.broadcast %9 : vector<1x64xf32> to vector<128x64xf32>
    %38 = arith.addf %36, %37 : vector<128x64xf32>
    %c0_25 = arith.constant 0 : index
    %c0_26 = arith.constant 0 : index
    %39 = vector.load %arg10[%c0_25, %c0_26] : memref<1x64xf32, #tpu.memory_space<vmem>>, vector<1x64xf32>
    %c0_27 = arith.constant 0 : index
    %c0_28 = arith.constant 0 : index
    %40 = vector.load %arg12[%c0_27, %c0_28] : memref<1x64xf32, #tpu.memory_space<vmem>>, vector<1x64xf32>
    %cst_29 = arith.constant 5.000000e-02 : f32
    %41 = vector.broadcast %cst_29 : f32 to vector<128x64xf32>
    %42 = arith.mulf %41, %38 : vector<128x64xf32>
    %43 = arith.truncf %38 : vector<128x64xf32> to vector<128x64xbf16>
    %cst_30 = arith.constant dense<0.000000e+00> : vector<128x64xf32>
    %44 = tpu.matmul %7, %43, %cst_30 {dimension_numbers = #tpu.dot_dimension_numbers<[1], [0], [0], [1], [0, 0, 1, 1], [], []>} : vector<128x128xbf16>, vector<128x64xbf16>, vector<128x64xf32> -> vector<128x64xf32>
    %cst_31 = arith.constant 0.949999988 : f32
    %45 = vector.broadcast %cst_31 : f32 to vector<128x64xf32>
    %46 = arith.mulf %45, %44 : vector<128x64xf32>
    %47 = arith.addf %42, %46 : vector<128x64xf32>
    %cst_32 = arith.constant 5.000000e-02 : f32
    %48 = vector.broadcast %cst_32 : f32 to vector<128x64xf32>
    %49 = arith.mulf %48, %38 : vector<128x64xf32>
    %50 = arith.truncf %47 : vector<128x64xf32> to vector<128x64xbf16>
    %cst_33 = arith.constant dense<0.000000e+00> : vector<128x64xf32>
    %51 = tpu.matmul %7, %50, %cst_33 {dimension_numbers = #tpu.dot_dimension_numbers<[1], [0], [0], [1], [0, 0, 1, 1], [], []>} : vector<128x128xbf16>, vector<128x64xbf16>, vector<128x64xf32> -> vector<128x64xf32>
    %cst_34 = arith.constant 0.949999988 : f32
    %52 = vector.broadcast %cst_34 : f32 to vector<128x64xf32>
    %53 = arith.mulf %52, %51 : vector<128x64xf32>
    %54 = arith.addf %49, %53 : vector<128x64xf32>
    %55 = arith.truncf %38 : vector<128x64xf32> to vector<128x64xbf16>
    %56 = arith.truncf %47 : vector<128x64xf32> to vector<128x64xbf16>
    %57 = arith.truncf %54 : vector<128x64xf32> to vector<128x64xbf16>
    %58 = tpu.concatenate %55, %56, %57 in 1 : vector<128x64xbf16>, vector<128x64xbf16>, vector<128x64xbf16> -> vector<128x192xbf16>
    %c0_35 = arith.constant 0 : index
    %c0_36 = arith.constant 0 : index
    %59 = vector.load %arg9[%c0_35, %c0_36] : memref<192x64xbf16, #tpu.memory_space<vmem>>, vector<192x64xbf16>
    %cst_37 = arith.constant dense<0.000000e+00> : vector<128x64xf32>
    %60 = tpu.matmul %58, %59, %cst_37 {dimension_numbers = #tpu.dot_dimension_numbers<[1], [0], [0], [1], [0, 0, 1, 1], [], []>} : vector<128x192xbf16>, vector<192x64xbf16>, vector<128x64xf32> -> vector<128x64xf32>
    %61 = vector.broadcast %39 : vector<1x64xf32> to vector<128x64xf32>
    %62 = arith.addf %60, %61 : vector<128x64xf32>
    %cst_38 = arith.constant 0.000000e+00 : f32
    %63 = vector.broadcast %cst_38 : f32 to vector<128x64xf32>
    %64 = arith.maximumf %62, %63 : vector<128x64xf32>
    %65 = arith.truncf %64 : vector<128x64xf32> to vector<128x64xbf16>
    %c0_39 = arith.constant 0 : index
    %c0_40 = arith.constant 0 : index
    %66 = vector.load %arg11[%c0_39, %c0_40] : memref<64x64xbf16, #tpu.memory_space<vmem>>, vector<64x64xbf16>
    %cst_41 = arith.constant dense<0.000000e+00> : vector<128x64xf32>
    %67 = tpu.matmul %65, %66, %cst_41 {dimension_numbers = #tpu.dot_dimension_numbers<[1], [0], [0], [1], [0, 0, 1, 1], [], []>} : vector<128x64xbf16>, vector<64x64xbf16>, vector<128x64xf32> -> vector<128x64xf32>
    %68 = vector.broadcast %40 : vector<1x64xf32> to vector<128x64xf32>
    %69 = arith.addf %67, %68 : vector<128x64xf32>
    %cst_42 = arith.constant 0.000000e+00 : bf16
    %70 = vector.broadcast %cst_42 : bf16 to vector<16x64xbf16>
    %c0_43 = arith.constant 0 : index
    %c0_44 = arith.constant 0 : index
    %71 = vector.load %arg22[%c0_43, %c0_44] : memref<160x64xbf16, #tpu.memory_space<vmem>>, vector<16x64xbf16>
    tpu.vector_store %arg22[%c0_43, %c0_44], %70 {strides = array<i32>} : memref<160x64xbf16, #tpu.memory_space<vmem>>, vector<16x64xbf16>,
    %cst_45 = arith.constant 0.000000e+00 : bf16
    %72 = vector.broadcast %cst_45 : bf16 to vector<16x64xbf16>
    %c144 = arith.constant 144 : index
    %c0_46 = arith.constant 0 : index
    %73 = vector.load %arg22[%c144, %c0_46] : memref<160x64xbf16, #tpu.memory_space<vmem>>, vector<16x64xbf16>
    tpu.vector_store %arg22[%c144, %c0_46], %72 {strides = array<i32>} : memref<160x64xbf16, #tpu.memory_space<vmem>>, vector<16x64xbf16>,
    %c0_47 = arith.constant 0 : index
    %c0_48 = arith.constant 0 : index
    %74 = vector.load %arg14[%c0_47, %c0_48] : memref<1x64xf32, #tpu.memory_space<vmem>>, vector<1x64xf32>
    %75 = arith.truncf %69 : vector<128x64xf32> to vector<128x64xbf16>
    %c16 = arith.constant 16 : index
    %c0_49 = arith.constant 0 : index
    %76 = vector.load %arg22[%c16, %c0_49] : memref<160x64xbf16, #tpu.memory_space<vmem>>, vector<128x64xbf16>
    tpu.vector_store %arg22[%c16, %c0_49], %75 {strides = array<i32>} : memref<160x64xbf16, #tpu.memory_space<vmem>>, vector<128x64xbf16>,
    %c0_50 = arith.constant 0 : index
    %c0_51 = arith.constant 0 : index
    %77 = vector.load %arg22[%c0_50, %c0_51] : memref<160x64xbf16, #tpu.memory_space<vmem>>, vector<128x64xbf16>
    %c32 = arith.constant 32 : index
    %c0_52 = arith.constant 0 : index
    %78 = vector.load %arg22[%c32, %c0_52] : memref<160x64xbf16, #tpu.memory_space<vmem>>, vector<128x64xbf16>
    %79 = tpu.concatenate %77, %75, %78 in 1 : vector<128x64xbf16>, vector<128x64xbf16>, vector<128x64xbf16> -> vector<128x192xbf16>
    %c0_53 = arith.constant 0 : index
    %c0_54 = arith.constant 0 : index
    %80 = vector.load %arg13[%c0_53, %c0_54] : memref<192x64xbf16, #tpu.memory_space<vmem>>, vector<192x64xbf16>
    %cst_55 = arith.constant dense<0.000000e+00> : vector<128x64xf32>
    %81 = tpu.matmul %79, %80, %cst_55 {dimension_numbers = #tpu.dot_dimension_numbers<[1], [0], [0], [1], [0, 0, 1, 1], [], []>} : vector<128x192xbf16>, vector<192x64xbf16>, vector<128x64xf32> -> vector<128x64xf32>
    %82 = vector.broadcast %74 : vector<1x64xf32> to vector<128x64xf32>
    %83 = arith.addf %81, %82 : vector<128x64xf32>
    %cst_56 = arith.constant 0.000000e+00 : f32
    %84 = vector.broadcast %cst_56 : f32 to vector<128x64xf32>
    %85 = arith.maximumf %83, %84 : vector<128x64xf32>
    %c0_57 = arith.constant 0 : index
    %c0_58 = arith.constant 0 : index
    %86 = vector.load %arg16[%c0_57, %c0_58] : memref<1x64xf32, #tpu.memory_space<vmem>>, vector<1x64xf32>
    %87 = arith.truncf %85 : vector<128x64xf32> to vector<128x64xbf16>
    %c16_59 = arith.constant 16 : index
    %c0_60 = arith.constant 0 : index
    %88 = vector.load %arg22[%c16_59, %c0_60] : memref<160x64xbf16, #tpu.memory_space<vmem>>, vector<128x64xbf16>
    tpu.vector_store %arg22[%c16_59, %c0_60], %87 {strides = array<i32>} : memref<160x64xbf16, #tpu.memory_space<vmem>>, vector<128x64xbf16>,
    %c0_61 = arith.constant 0 : index
    %c0_62 = arith.constant 0 : index
    %89 = vector.load %arg22[%c0_61, %c0_62] : memref<160x64xbf16, #tpu.memory_space<vmem>>, vector<128x64xbf16>
    %c32_63 = arith.constant 32 : index
    %c0_64 = arith.constant 0 : index
    %90 = vector.load %arg22[%c32_63, %c0_64] : memref<160x64xbf16, #tpu.memory_space<vmem>>, vector<128x64xbf16>
    %91 = tpu.concatenate %89, %87, %90 in 1 : vector<128x64xbf16>, vector<128x64xbf16>, vector<128x64xbf16> -> vector<128x192xbf16>
    %c0_65 = arith.constant 0 : index
    %c0_66 = arith.constant 0 : index
    %92 = vector.load %arg15[%c0_65, %c0_66] : memref<192x64xbf16, #tpu.memory_space<vmem>>, vector<192x64xbf16>
    %cst_67 = arith.constant dense<0.000000e+00> : vector<128x64xf32>
    %93 = tpu.matmul %91, %92, %cst_67 {dimension_numbers = #tpu.dot_dimension_numbers<[1], [0], [0], [1], [0, 0, 1, 1], [], []>} : vector<128x192xbf16>, vector<192x64xbf16>, vector<128x64xf32> -> vector<128x64xf32>
    %94 = vector.broadcast %86 : vector<1x64xf32> to vector<128x64xf32>
    %95 = arith.addf %93, %94 : vector<128x64xf32>
    %96 = arith.truncf %95 : vector<128x64xf32> to vector<128x64xbf16>
    %c0_68 = arith.constant 0 : index
    %c0_69 = arith.constant 0 : index
    %97 = vector.load %arg17[%c0_68, %c0_69] : memref<64x64xbf16, #tpu.memory_space<vmem>>, vector<64x64xbf16>
    %cst_70 = arith.constant dense<0.000000e+00> : vector<128x64xf32>
    %98 = tpu.matmul %96, %97, %cst_70 {dimension_numbers = #tpu.dot_dimension_numbers<[1], [0], [0], [1], [0, 0, 1, 1], [], []>} : vector<128x64xbf16>, vector<64x64xbf16>, vector<128x64xf32> -> vector<128x64xf32>
    %c0_71 = arith.constant 0 : index
    %c0_72 = arith.constant 0 : index
    %99 = vector.load %arg18[%c0_71, %c0_72] : memref<1x64xf32, #tpu.memory_space<vmem>>, vector<1x64xf32>
    %100 = vector.broadcast %99 : vector<1x64xf32> to vector<128x64xf32>
    %101 = arith.addf %98, %100 : vector<128x64xf32>
    %cst_73 = arith.constant 0.000000e+00 : f32
    %102 = vector.broadcast %cst_73 : f32 to vector<128x64xf32>
    %103 = arith.maximumf %101, %102 : vector<128x64xf32>
    %104 = vector.extract_strided_slice %103 {offsets = [0, 0], sizes = [16, 64], strides = [1, 1]} : vector<128x64xf32> to vector<16x64xf32>
    %105 = vector.extract_strided_slice %103 {offsets = [16, 0], sizes = [16, 64], strides = [1, 1]} : vector<128x64xf32> to vector<16x64xf32>
    %106 = vector.extract_strided_slice %103 {offsets = [32, 0], sizes = [16, 64], strides = [1, 1]} : vector<128x64xf32> to vector<16x64xf32>
    %107 = vector.extract_strided_slice %103 {offsets = [48, 0], sizes = [16, 64], strides = [1, 1]} : vector<128x64xf32> to vector<16x64xf32>
    %108 = vector.extract_strided_slice %103 {offsets = [64, 0], sizes = [16, 64], strides = [1, 1]} : vector<128x64xf32> to vector<16x64xf32>
    %109 = vector.extract_strided_slice %103 {offsets = [80, 0], sizes = [16, 64], strides = [1, 1]} : vector<128x64xf32> to vector<16x64xf32>
    %110 = vector.extract_strided_slice %103 {offsets = [96, 0], sizes = [16, 64], strides = [1, 1]} : vector<128x64xf32> to vector<16x64xf32>
    %111 = vector.extract_strided_slice %103 {offsets = [112, 0], sizes = [16, 64], strides = [1, 1]} : vector<128x64xf32> to vector<16x64xf32>
    %112 = arith.addf %104, %105 : vector<16x64xf32>
    %113 = arith.addf %106, %107 : vector<16x64xf32>
    %114 = arith.addf %108, %109 : vector<16x64xf32>
    %115 = arith.addf %110, %111 : vector<16x64xf32>
    %116 = arith.addf %112, %113 : vector<16x64xf32>
    %117 = arith.addf %114, %115 : vector<16x64xf32>
    %118 = arith.addf %116, %117 : vector<16x64xf32>
    %119 = arith.truncf %118 : vector<16x64xf32> to vector<16x64xbf16>
    %c0_74 = arith.constant 0 : index
    %c0_75 = arith.constant 0 : index
    %120 = vector.load %arg19[%c0_74, %c0_75] : memref<64x8xbf16, #tpu.memory_space<vmem>>, vector<64x8xbf16>
    %cst_76 = arith.constant dense<0.000000e+00> : vector<16x8xf32>
    %121 = tpu.matmul %119, %120, %cst_76 {dimension_numbers = #tpu.dot_dimension_numbers<[1], [0], [0], [1], [0, 0, 1, 1], [], []>} : vector<16x64xbf16>, vector<64x8xbf16>, vector<16x8xf32> -> vector<16x8xf32>
    %c0_77 = arith.constant 0 : index
    %c0_78 = arith.constant 0 : index
    %122 = vector.load %arg20[%c0_77, %c0_78] : memref<1x8xf32, #tpu.memory_space<vmem>>, vector<1x8xf32>
    %123 = vector.broadcast %122 : vector<1x8xf32> to vector<16x8xf32>
    %124 = arith.addf %121, %123 : vector<16x8xf32>
    %c0_79 = arith.constant 0 : index
    %c0_80 = arith.constant 0 : index
    %c0_81 = arith.constant 0 : index
    %125 = vector.load %arg21[%c0_79, %c0_80, %c0_81] : memref<1x16x8xf32, #tpu.memory_space<vmem>>, vector<1x16x8xf32>
    %126 = vector.shape_cast %125 : vector<1x16x8xf32> to vector<16x8xf32>
    %127 = vector.shape_cast %124 : vector<16x8xf32> to vector<1x16x8xf32>
    tpu.vector_store %arg21[%c0_79, %c0_80, %c0_81], %127 {strides = array<i32>} : memref<1x16x8xf32, #tpu.memory_space<vmem>>, vector<1x16x8xf32>,
    return
  }
  func.func @transform_0(%arg0: i32) -> (i32, i32, i32) {
    %c0_i32 = arith.constant 0 : i32
    %c0_i32_0 = arith.constant 0 : i32
    %c0_i32_1 = arith.constant 0 : i32
    return %arg0, %c0_i32, %c0_i32_0 : i32, i32, i32
  }
  func.func @transform_1(%arg0: i32) -> (i32, i32) {
    %c0_i32 = arith.constant 0 : i32
    %c0_i32_0 = arith.constant 0 : i32
    %c0_i32_1 = arith.constant 0 : i32
    return %c0_i32, %c0_i32_0 : i32, i32
  }
  func.func @transform_2(%arg0: i32) -> (i32, i32) {
    %c0_i32 = arith.constant 0 : i32
    %c0_i32_0 = arith.constant 0 : i32
    %c0_i32_1 = arith.constant 0 : i32
    return %c0_i32, %c0_i32_0 : i32, i32
  }
  func.func @transform_3(%arg0: i32) -> (i32, i32) {
    %c0_i32 = arith.constant 0 : i32
    %c0_i32_0 = arith.constant 0 : i32
    %c0_i32_1 = arith.constant 0 : i32
    return %c0_i32, %c0_i32_0 : i32, i32
  }
  func.func @transform_4(%arg0: i32) -> (i32, i32) {
    %c0_i32 = arith.constant 0 : i32
    %c0_i32_0 = arith.constant 0 : i32
    %c0_i32_1 = arith.constant 0 : i32
    return %c0_i32, %c0_i32_0 : i32, i32
  }
  func.func @transform_5(%arg0: i32) -> (i32, i32) {
    %c0_i32 = arith.constant 0 : i32
    %c0_i32_0 = arith.constant 0 : i32
    %c0_i32_1 = arith.constant 0 : i32
    return %c0_i32, %c0_i32_0 : i32, i32
  }
  func.func @transform_6(%arg0: i32) -> (i32, i32) {
    %c0_i32 = arith.constant 0 : i32
    %c0_i32_0 = arith.constant 0 : i32
    %c0_i32_1 = arith.constant 0 : i32
    return %c0_i32, %c0_i32_0 : i32, i32
  }
  func.func @transform_7(%arg0: i32) -> (i32, i32) {
    %c0_i32 = arith.constant 0 : i32
    %c0_i32_0 = arith.constant 0 : i32
    %c0_i32_1 = arith.constant 0 : i32
    return %c0_i32, %c0_i32_0 : i32, i32
  }
  func.func @transform_8(%arg0: i32) -> (i32, i32) {
    %c0_i32 = arith.constant 0 : i32
    %c0_i32_0 = arith.constant 0 : i32
    %c0_i32_1 = arith.constant 0 : i32
    return %c0_i32, %c0_i32_0 : i32, i32
  }
  func.func @transform_9(%arg0: i32) -> (i32, i32) {
    %c0_i32 = arith.constant 0 : i32
    %c0_i32_0 = arith.constant 0 : i32
    %c0_i32_1 = arith.constant 0 : i32
    return %c0_i32, %c0_i32_0 : i32, i32
  }
  func.func @transform_10(%arg0: i32) -> (i32, i32) {
    %c0_i32 = arith.constant 0 : i32
    %c0_i32_0 = arith.constant 0 : i32
    %c0_i32_1 = arith.constant 0 : i32
    return %c0_i32, %c0_i32_0 : i32, i32
  }
  func.func @transform_11(%arg0: i32) -> (i32, i32) {
    %c0_i32 = arith.constant 0 : i32
    %c0_i32_0 = arith.constant 0 : i32
    %c0_i32_1 = arith.constant 0 : i32
    return %c0_i32, %c0_i32_0 : i32, i32
  }
  func.func @transform_12(%arg0: i32) -> (i32, i32) {
    %c0_i32 = arith.constant 0 : i32
    %c0_i32_0 = arith.constant 0 : i32
    %c0_i32_1 = arith.constant 0 : i32
    return %c0_i32, %c0_i32_0 : i32, i32
  }
  func.func @transform_13(%arg0: i32) -> (i32, i32) {
    %c0_i32 = arith.constant 0 : i32
    %c0_i32_0 = arith.constant 0 : i32
    %c0_i32_1 = arith.constant 0 : i32
    return %c0_i32, %c0_i32_0 : i32, i32
  }
  func.func @transform_14(%arg0: i32) -> (i32, i32) {
    %c0_i32 = arith.constant 0 : i32
    %c0_i32_0 = arith.constant 0 : i32
    %c0_i32_1 = arith.constant 0 : i32
    return %c0_i32, %c0_i32_0 : i32, i32
  }
  func.func @transform_15(%arg0: i32) -> (i32, i32) {
    %c0_i32 = arith.constant 0 : i32
    %c0_i32_0 = arith.constant 0 : i32
    %c0_i32_1 = arith.constant 0 : i32
    return %c0_i32, %c0_i32_0 : i32, i32
  }
  func.func @transform_16(%arg0: i32) -> (i32, i32) {
    %c0_i32 = arith.constant 0 : i32
    %c0_i32_0 = arith.constant 0 : i32
    %c0_i32_1 = arith.constant 0 : i32
    return %c0_i32, %c0_i32_0 : i32, i32
  }
  func.func @transform_17(%arg0: i32) -> (i32, i32) {
    %c0_i32 = arith.constant 0 : i32
    %c0_i32_0 = arith.constant 0 : i32
    %c0_i32_1 = arith.constant 0 : i32
    return %c0_i32, %c0_i32_0 : i32, i32
  }
  func.func @transform_18(%arg0: i32) -> (i32, i32) {
    %c0_i32 = arith.constant 0 : i32
    %c0_i32_0 = arith.constant 0 : i32
    %c0_i32_1 = arith.constant 0 : i32
    return %c0_i32, %c0_i32_0 : i32, i32
  }
  func.func @transform_19(%arg0: i32) -> (i32, i32) {
    %c0_i32 = arith.constant 0 : i32
    %c0_i32_0 = arith.constant 0 : i32
    %c0_i32_1 = arith.constant 0 : i32
    return %c0_i32, %c0_i32_0 : i32, i32
  }
  func.func @transform_20(%arg0: i32) -> (i32, i32, i32) {
    %c0_i32 = arith.constant 0 : i32
    %c0_i32_0 = arith.constant 0 : i32
    %c0_i32_1 = arith.constant 0 : i32
    return %arg0, %c0_i32, %c0_i32_0 : i32, i32, i32
  }
}

</mosaic_0001>

<bundles_post_ra>
// kernel: mtgnn_forward.1
= control target key start
LH: loop header
LB: loop body
LE: loop exit
PB: predicated region body
PF: predicated region fallthrough
CT: control target
= control target key end

     0   :  { %vm155_vm0 = vcmask 1043456   ;;  %vm130_vm1 = vcmask 64512   ;;  %vm644_vm2 = vcmask 523264   ;;  %vm3345_vm3 = vmmov 0   ;;  %s4392_s2 = inlined_call_operand.vmem [shape: bf16[8,64], index: 2, kind: input, shape index: {}]   ;;  %s4393_s0 = inlined_call_operand.vmem [shape: bf16[1,128,8], index: 0, kind: input, shape index: {}]   ;;  %s4394_s1 = inlined_call_operand.vmem [shape: bf16[128,128], index: 1, kind: input, shape index: {}]   ;;  %s4395_s3 = inlined_call_operand.vmem [shape: f32[1,64], index: 3, kind: input, shape index: {}]   ;;  %s4396_s4 = inlined_call_operand.vmem [shape: bf16[192,64], index: 4, kind: input, shape index: {}]   ;;  %s4397_s6 = inlined_call_operand.vmem [shape: bf16[64,64], index: 6, kind: input, shape index: {}]   ;;  %s4398_s5 = inlined_call_operand.vmem [shape: f32[1,64], index: 5, kind: input, shape index: {}]   ;;  %s4399_s7 = inlined_call_operand.vmem [shape: f32[1,64], index: 7, kind: input, shape index: {}]   ;;  %s4400_s8 = inlined_call_operand.vmem [shape: bf16[192,64], index: 8, kind: input, shape index: {}]   ;;  %s4401_s10 = inlined_call_operand.vmem [shape: bf16[64,64], index: 10, kind: input, shape index: {}]   ;;  %s4402_s9 = inlined_call_operand.vmem [shape: f32[1,64], index: 9, kind: input, shape index: {}]   ;;  %s4403_s12 = inlined_call_operand.vmem [shape: bf16[192,64], index: 12, kind: input, shape index: {}]   ;;  %s4404_s11 = inlined_call_operand.vmem [shape: f32[1,64], index: 11, kind: input, shape index: {}]   ;;  %s4405_s14 = inlined_call_operand.vmem [shape: bf16[192,64], index: 14, kind: input, shape index: {}]   ;;  %s4406_s13 = inlined_call_operand.vmem [shape: f32[1,64], index: 13, kind: input, shape index: {}]   ;;  %s4407_s16 = inlined_call_operand.vmem [shape: bf16[64,64], index: 16, kind: input, shape index: {}]   ;;  %s4408_s15 = inlined_call_operand.vmem [shape: f32[1,64], index: 15, kind: input, shape index: {}]   ;;  %s4409_s18 = inlined_call_operand.vmem [shape: bf16[64,8], index: 18, kind: input, shape index: {}]   ;;  %s4410_s17 = inlined_call_operand.vmem [shape: f32[1,64], index: 17, kind: input, shape index: {}]   ;;  %s4411_s19 = inlined_call_operand.vmem [shape: f32[1,8], index: 19, kind: input, shape index: {}]   ;;  %s4412_s20 = inlined_call_operand.vmem [shape: f32[1,16,8], index: 20, kind: output, shape index: {}]  }
   0x1   :  { %4416 = sst [smem:[#allocation3_spill]] %s4392_s2 }
   0x2   :  { %4417 = sst [smem:[#allocation4_spill]] %s4393_s0  ;;  %s4421_s23 = sld [smem:[#allocation3_spill]] }
   0x3   :  { %4418 = sst [smem:[#allocation5_spill]] %s4394_s1  ;;  %s4422_s25 = sld [smem:[#allocation4_spill]] }
   0x4   :  { %4419 = sst [smem:[#allocation6_spill]] %s4395_s3  ;;  %s4423_s27 = sld [smem:[#allocation5_spill]] }
   0x5   :  { %4420 = sst [smem:[#allocation7_spill]] %s4396_s4  ;;  %s4424_s29 = sld [smem:[#allocation6_spill]] }
   0x6   :  { %s4425_s21 = sld [smem:[#allocation7_spill]] }
   0x8   :  { %v82_v0 = vld [vmem:[%s4421_s23] sm:$0xf] }
   0x9   :  { %3249 = vmatprep.subr.msk.bf16.mxu0 %vm155_vm0, %v82_v0  ;;  %v157_v1 = vsel %vm155_vm0, %v82_v0, 0  ;;  %v3254_v2 = vld [vmem:[%s4422_s25] sm:$0xff]   ;;  %v3255_v3 = vld [vmem:[%s4422_s25 + $0x8] sm:$0xff]   ;;  %v3256_v4 = vld [vmem:[%s4422_s25 + $0x10] sm:$0xff]  }
   0xa   :  { %3020 = vmatpush3.bf16.msra.mxu0 %v157_v1  ;;  %3021 = vmatprep.mubr.msk.bf16.mxu0 %vm130_vm1, %v3254_v2  ;;  %v3257_v5 = vld [vmem:[%s4422_s25 + $0x18] sm:$0xff]   ;;  %v3258_v6 = vld [vmem:[%s4422_s25 + $0x20] sm:$0xff]   ;;  %v3259_v7 = vld [vmem:[%s4422_s25 + $0x28] sm:$0xff]  }
   0xb   :  { %v3260_v8 = vld [vmem:[%s4422_s25 + $0x30] sm:$0xff]   ;;  %v3261_v9 = vld [vmem:[%s4422_s25 + $0x38] sm:$0xff]   ;;  %v3489_v10 = vld [vmem:[%s4423_s27] sm:$0xff]   ;;  %s3342_s25 = smov 64  }
   0xc   :  { %3053 = vmatprep.mubr.bf16.mxu1 %v3489_v10  ;;  %v2751_v12 = vld [vmem:[%s4424_s29] ss:$0 sm:$0xff]  ;;  %v3578_v52 = vld [vmem:[%s4423_s27 + $0x8] sm:$0xff]   ;;  %v3584_v53 = vld [vmem:[%s4423_s27 + $0x10] sm:$0xff]  }
   0xd   :  { %3022 = vmatmul.mubr.msk.bf16.vlgmr.msra.gmra.mrb[0].mxu0 %vm130_vm1, %v3255_v3  ;;  %v3591_v54 = vld [vmem:[%s4423_s27 + $0x18] sm:$0xff]   ;;  %v3596_v55 = vld [vmem:[%s4423_s27 + $0x20] sm:$0xff]   ;;  %v3603_v56 = vld [vmem:[%s4423_s27 + $0x28] sm:$0xff]  }
   0xe   :  { %3025 = vmatprep.mubr.msk.bf16.mxu0 %vm130_vm1, %v3256_v4  ;;  %v3608_v57 = vld [vmem:[%s4423_s27 + $0x30] sm:$0xff]   ;;  %v3615_v58 = vld [vmem:[%s4423_s27 + $0x38] sm:$0xff]  }
  0x15   :  { %3026 = vmatmul.mubr.msk.bf16.gmra.mrb[4].mxu0 %vm130_vm1, %v3257_v5 }
  0x16   :  { %3029 = vmatprep.mubr.msk.bf16.mxu0 %vm130_vm1, %v3258_v6 }
  0x1d   :  { %3030 = vmatmul.mubr.msk.bf16.gmra.mrb[8].mxu0 %vm130_vm1, %v3259_v7 }
  0x1e   :  { %3033 = vmatprep.mubr.msk.bf16.mxu0 %vm130_vm1, %v3260_v8 }
  0x25   :  { %3034 = vmatmul.mubr.msk.bf16.gmra.mrb[12].mxu0 %vm130_vm1, %v3261_v9 }
  0x26   :  { %3085 = vmatprep.mubr.bf16.mxu0 %v3489_v10 }
  0xe0   :  { %v3023_v11 = vpop.f32.mrb[0].mxu0 }
  0xe1   :  { %v193_v13 = vpop.f32.mrb[1].mxu0  ;;  %v3496_v15 = vadd.f32 %v3023_v11, %v2751_v12 }
  0xe2   :  { %v3024_v14 = vpop.f32.mrb[2].mxu0  ;;  %v3500_v18 = vadd.f32 %v2751_v12, %v193_v13 }
  0xe3   :  { %v3498_v16 = vadd.f32 %v3024_v14, %v2751_v12  ;;  %v196_v17 = vpop.f32.mrb[3].mxu0  ;;  %v3619_v62 = vmul.f32 0.05, %v3496_v15 }
  0xe4   :  { %v3502_v19 = vadd.f32 %v2751_v12, %v196_v17  ;;  %v3625_v4 = vmul.f32 0.05, %v3500_v18 }
  0xe5   :  { %v3506_v20 = vpack.c.bf16 %v3498_v16, %v3496_v15  ;;  %v3622_v1 = vmul.f32 0.05, %v3498_v16 }
  0xe6   :  { %v3510_v21 = vpack.c.bf16 %v3502_v19, %v3500_v18  ;;  %v3628_v5 = vmul.f32 0.05, %v3502_v19 }
  0xe8   :  { %v3027_v22 = vpop.f32.mrb[4].mxu0  ;;  %3037 = vmatprep.subr.bf16.mxu1 %v3510_v21 }
  0xe9   :  { %v209_v23 = vpop.f32.mrb[5].mxu0  ;;  %3038 = vmatpush3.bf16.msra.mxu1 %v3510_v21  ;;  %v3515_v25 = vadd.f32 %v3027_v22, %v2751_v12 }
  0xea   :  { %v3028_v24 = vpop.f32.mrb[6].mxu0  ;;  %3039 = vmatprep.subr.bf16.mxu1 %v3506_v20  ;;  %v3519_v28 = vadd.f32 %v2751_v12, %v209_v23 }
  0xeb   :  { %v3517_v26 = vadd.f32 %v3028_v24, %v2751_v12  ;;  %v212_v27 = vpop.f32.mrb[7].mxu0  ;;  %v3635_v17 = vmul.f32 0.05, %v3515_v25 }
  0xec   :  { %v3521_v29 = vadd.f32 %v2751_v12, %v212_v27  ;;  %v3642_v27 = vmul.f32 0.05, %v3519_v28 }
  0xed   :  { %v3525_v30 = vpack.c.bf16 %v3517_v26, %v3515_v25  ;;  %3040 = vmatpush3.bf16.msra.mxu1 %v3506_v20  ;;  %v3639_v22 = vmul.f32 0.05, %v3517_v26 }
  0xee   :  { %v3530_v31 = vpack.c.bf16 %v3521_v29, %v3519_v28 }
  0xf0   :  { %v3031_v32 = vpop.f32.mrb[8].mxu0  ;;  %3041 = vmatprep.subr.bf16.mxu1 %v3530_v31 }
  0xf1   :  { %v225_v33 = vpop.f32.mrb[9].mxu0  ;;  %3042 = vmatpush3.bf16.msra.mxu1 %v3530_v31  ;;  %v3535_v35 = vadd.f32 %v3031_v32, %v2751_v12  ;;  %v3645_v32 = vmul.f32 0.05, %v3521_v29 }
  0xf2   :  { %v3032_v34 = vpop.f32.mrb[10].mxu0  ;;  %3043 = vmatprep.subr.bf16.mxu1 %v3525_v30  ;;  %v3539_v38 = vadd.f32 %v2751_v12, %v225_v33 }
  0xf3   :  { %v3537_v36 = vadd.f32 %v3032_v34, %v2751_v12  ;;  %v228_v37 = vpop.f32.mrb[11].mxu0 }
  0xf4   :  { %v3541_v39 = vadd.f32 %v2751_v12, %v228_v37  ;;  %v3656_v29 = vmul.f32 0.05, %v3539_v38 }
  0xf5   :  { %v3545_v40 = vpack.c.bf16 %v3537_v36, %v3535_v35  ;;  %3044 = vmatpush3.bf16.msra.mxu1 %v3525_v30 }
  0xf6   :  { %v3550_v41 = vpack.c.bf16 %v3541_v39, %v3539_v38 }
  0xf8   :  { %v3035_v42 = vpop.f32.mrb[12].mxu0  ;;  %3045 = vmatprep.subr.bf16.mxu1 %v3550_v41 }
  0xf9   :  { %v241_v43 = vpop.f32.mrb[13].mxu0  ;;  %3046 = vmatpush3.bf16.msra.mxu1 %v3550_v41  ;;  %v3555_v45 = vadd.f32 %v3035_v42, %v2751_v12  ;;  %v3653_v42 = vmul.f32 0.05, %v3535_v35 }
  0xfa   :  { %v3036_v44 = vpop.f32.mrb[14].mxu0  ;;  %3047 = vmatprep.subr.bf16.mxu1 %v3545_v40  ;;  %v3559_v48 = vadd.f32 %v2751_v12, %v241_v43  ;;  %v3659_v43 = vmul.f32 0.05, %v3537_v36 }
  0xfb   :  { %v3557_v46 = vadd.f32 %v3036_v44, %v2751_v12  ;;  %v244_v47 = vpop.f32.mrb[15].mxu0 }
  0xfc   :  { %v3561_v49 = vadd.f32 %v2751_v12, %v244_v47  ;;  %v3669_v38 = vmul.f32 0.05, %v3559_v48 }
  0xfd   :  { %v3565_v50 = vpack.c.bf16 %v3557_v46, %v3555_v45  ;;  %3048 = vmatpush3.bf16.msra.mxu1 %v3545_v40 }
  0xfe   :  { %v3570_v51 = vpack.c.bf16 %v3561_v49, %v3559_v48  ;;  %v3685_v48 = vmul.f32 0.05, %v3561_v49 }
 0x100   :  { %3049 = vmatprep.subr.bf16.mxu1 %v3570_v51 }
 0x101   :  { %3050 = vmatpush3.bf16.msra.mxu1 %v3570_v51 }
 0x102   :  { %3051 = vmatprep.subr.bf16.mxu1 %v3565_v50 }
 0x105   :  { %3052 = vmatpush3.bf16.msra.mxu1 %v3565_v50 }
 0x108   :  { %3054 = vmatmul.mubr.bf16.vlgmr.msra.gmra.mrb[0].mxu1 %v3578_v52 }
 0x109   :  { %3057 = vmatprep.mubr.bf16.mxu1 %v3584_v53 }
 0x110   :  { %3058 = vmatmul.mubr.bf16.gmra.mrb[4].mxu1 %v3591_v54 }
 0x111   :  { %3061 = vmatprep.mubr.bf16.mxu1 %v3596_v55 }
 0x118   :  { %3062 = vmatmul.mubr.bf16.gmra.mrb[8].mxu1 %v3603_v56 }
 0x119   :  { %3065 = vmatprep.mubr.bf16.mxu1 %v3608_v57 }
 0x120   :  { %3066 = vmatmul.mubr.bf16.gmra.mrb[12].mxu1 %v3615_v58 }
 0x1db   :  { %v3055_v59 = vpop.f32.mrb[0].mxu1 }
 0x1dc   :  { %v445_v60 = vmul.f32 0.95, %v3055_v59  ;;  %v380_v61 = vpop.f32.mrb[1].mxu1  ;;  %v3662_v59 = vmul.f32 0.05, %v3541_v39 }
 0x1dd   :  { %v443_v63 = vmul.f32 0.95, %v380_v61  ;;  %v3056_v0 = vpop.f32.mrb[2].mxu1 }
 0x1de   :  { %v446_v2 = vmul.f32 0.95, %v3056_v0  ;;  %v383_v3 = vpop.f32.mrb[3].mxu1  ;;  %v461_v7 = vadd.f32 %v445_v60, %v3619_v62 }
 0x1df   :  { %v444_v6 = vmul.f32 0.95, %v383_v3  ;;  %v459_v9 = vadd.f32 %v443_v63, %v3625_v4  ;;  %v3665_v63 = vmul.f32 0.05, %v3555_v45  ;;  %v3672_v3 = vmul.f32 0.05, %v3557_v46 }
 0x1e0   :  { %v462_v8 = vadd.f32 %v446_v2, %v3622_v1  ;;  %v3270_v46 = vld [vmem:[%s4425_s21] sm:$0xff]  }
 0x1e1   :  { %v460_v11 = vadd.f32 %v444_v6, %v3628_v5 }
 0x1e2   :  { %v476_v12 = vpack.c.bf16 %v462_v8, %v461_v7  ;;  %v3343_v7 = vmov 0  }
 0x1e3   :  { %v3059_v13 = vpop.f32.mrb[4].mxu1  ;;  %v475_v14 = vpack.c.bf16 %v460_v11, %v459_v9  ;;  %803 = vmatprep.subr.bf16.mxu1 %v3343_v7  ;;  %1845 = vst.msk [vmem:[#allocation2] sm:$0xff] %vm644_vm2, %v3343_v7  ;;  %1846 = vst.msk [vmem:[#allocation2 + $0x48] sm:$0xff] %vm644_vm2, %v3343_v7 }
 0x1e4   :  { %v449_v15 = vmul.f32 0.95, %v3059_v13  ;;  %v396_v16 = vpop.f32.mrb[5].mxu1  ;;  %804 = vmatpush1.bf16.msra.mxu1 %v3270_v46 }
 0x1e5   :  { %v447_v18 = vmul.f32 0.95, %v396_v16  ;;  %v3060_v19 = vpop.f32.mrb[6].mxu1  ;;  %628 = vrot.lane.b32.xlu0 %v475_v14, %s3342_s25  ;;  %3069 = vmatprep.subr.bf16.mxu0 %v475_v14 }
 0x1e6   :  { %v450_v23 = vmul.f32 0.95, %v3060_v19  ;;  %v399_v24 = vpop.f32.mrb[7].mxu1  ;;  %3070 = vmatpush3.bf16.msra.mxu0 %v475_v14  ;;  %v465_v33 = vadd.f32 %v449_v15, %v3635_v17  ;;  %805 = vmatprep.subr.bf16.mxu1 %v3343_v7 }
 0x1e7   :  { %v448_v25 = vmul.f32 0.95, %v399_v24  ;;  %3071 = vmatprep.subr.bf16.mxu0 %v476_v12  ;;  %v463_v37 = vadd.f32 %v447_v18, %v3642_v27  ;;  %v3272_v24 = vld [vmem:[%s4425_s21 + $0x10] sm:$0xff]  }
 0x1e8   :  { %v466_v34 = vadd.f32 %v450_v23, %v3639_v22 }
 0x1e9   :  { %v464_v26 = vadd.f32 %v448_v25, %v3645_v32  ;;  %630 = vrot.lane.b32.xlu0 %v476_v12, %s3342_s25 }
 0x1ea   :  { %3072 = vmatpush3.bf16.msra.mxu0 %v476_v12  ;;  %v478_v28 = vpack.c.bf16 %v466_v34, %v465_v33  ;;  %v3271_v12 = vld [vmem:[%s4425_s21 + $0x8] sm:$0xff]  }
 0x1eb   :  { %v3063_v44 = vpop.f32.mrb[8].mxu1  ;;  %v477_v47 = vpack.c.bf16 %v464_v26, %v463_v37  ;;  %806 = vmatpush1.bf16.msra.mxu1 %v3271_v12 }
 0x1ec   :  { %v453_v60 = vmul.f32 0.95, %v3063_v44  ;;  %v412_v61 = vpop.f32.mrb[9].mxu1  ;;  %807 = vmatprep.subr.bf16.mxu1 %v3343_v7  ;;  %v3273_v44 = vld [vmem:[%s4425_s21 + $0x18] sm:$0xff]  }
 0x1ed   :  { %v451_v35 = vmul.f32 0.95, %v412_v61  ;;  %632 = vrot.lane.b32.xlu1 %v477_v47, %s3342_s25  ;;  %v3064_v0 = vpop.f32.mrb[10].mxu1  ;;  %3073 = vmatprep.subr.bf16.mxu0 %v477_v47  ;;  %v3275_v61 = vld [vmem:[%s4425_s21 + $0x28] sm:$0xff]  }
 0x1ee   :  { %v454_v36 = vmul.f32 0.95, %v3064_v0  ;;  %v415_v2 = vpop.f32.mrb[11].mxu1  ;;  %3074 = vmatpush3.bf16.msra.mxu0 %v477_v47  ;;  %v469_v45 = vadd.f32 %v453_v60, %v3653_v42  ;;  %v3274_v60 = vld [vmem:[%s4425_s21 + $0x20] sm:$0xff]   ;;  %v3277_v0 = vld [vmem:[%s4425_s21 + $0x38] sm:$0xff]  }
 0x1ef   :  { %v452_v39 = vmul.f32 0.95, %v415_v2  ;;  %3075 = vmatprep.subr.bf16.mxu0 %v478_v28  ;;  %v467_v8 = vadd.f32 %v451_v35, %v3656_v29  ;;  %808 = vmatpush1.bf16.msra.mxu1 %v3272_v24  ;;  %v3276_v35 = vld [vmem:[%s4425_s21 + $0x30] sm:$0xff]   ;;  %v3279_v2 = vld [vmem:[%s4425_s21 + $0x48] sm:$0xff]  }
 0x1f0   :  { %v470_v6 = vadd.f32 %v454_v36, %v3659_v43  ;;  %809 = vmatprep.subr.bf16.mxu1 %v3343_v7  ;;  %v3278_v36 = vld [vmem:[%s4425_s21 + $0x40] sm:$0xff]  }
 0x1f1   :  { %v468_v9 = vadd.f32 %v452_v39, %v3662_v59  ;;  %634 = vrot.lane.b32.xlu1 %v478_v28, %s3342_s25  ;;  %v3280_v39 = vld [vmem:[%s4425_s21 + $0x50] sm:$0xff]  }
 0x1f2   :  { %3076 = vmatpush3.bf16.msra.mxu0 %v478_v28  ;;  %v480_v11 = vpack.c.bf16 %v470_v6, %v469_v45  ;;  %v3281_v45 = vld [vmem:[%s4425_s21 + $0x58] sm:$0xff]  }
 0x1f3   :  { %v3067_v13 = vpop.f32.mrb[12].mxu1  ;;  %v479_v14 = vpack.c.bf16 %v468_v9, %v467_v8  ;;  %810 = vmatpush1.bf16.msra.mxu1 %v3273_v44 }
 0x1f4   :  { %v457_v15 = vmul.f32 0.95, %v3067_v13  ;;  %v428_v49 = vpop.f32.mrb[13].mxu1  ;;  %811 = vmatprep.subr.bf16.mxu1 %v3343_v7 }
 0x1f5   :  { %v455_v16 = vmul.f32 0.95, %v428_v49  ;;  %638 = vrot.lane.b32.xlu1 %v480_v11, %s3342_s25  ;;  %v3068_v18 = vpop.f32.mrb[14].mxu1  ;;  %636 = vrot.lane.b32.xlu0 %v479_v14, %s3342_s25 }
 0x1f6   :  { %v458_v19 = vmul.f32 0.95, %v3068_v18  ;;  %3077 = vmatprep.subr.bf16.mxu0 %v479_v14  ;;  %v431_v23 = vpop.f32.mrb[15].mxu1  ;;  %v473_v33 = vadd.f32 %v457_v15, %v3665_v63 }
 0x1f7   :  { %v456_v25 = vmul.f32 0.95, %v431_v23  ;;  %3078 = vmatpush3.bf16.msra.mxu0 %v479_v14  ;;  %v471_v37 = vadd.f32 %v455_v16, %v3669_v38  ;;  %812 = vmatpush1.bf16.msra.mxu1 %v3274_v60 }
 0x1f8   :  { %v474_v34 = vadd.f32 %v458_v19, %v3672_v3  ;;  %3079 = vmatprep.subr.bf16.mxu0 %v480_v11  ;;  %813 = vmatprep.subr.bf16.mxu1 %v3343_v7 }
 0x1f9   :  { %v472_v26 = vadd.f32 %v456_v25, %v3685_v48 }
 0x1fa   :  { %v482_v28 = vpack.c.bf16 %v474_v34, %v473_v33 }
 0x1fb   :  { %3080 = vmatpush3.bf16.msra.mxu0 %v480_v11  ;;  %v481_v47 = vpack.c.bf16 %v472_v26, %v471_v37  ;;  %814 = vmatpush1.bf16.msra.mxu1 %v3275_v61 }
 0x1fc   :  { %642 = vrot.lane.b32.xlu1 %v482_v28, %s3342_s25  ;;  %815 = vmatprep.subr.bf16.mxu1 %v3343_v7 }
 0x1fd   :  { %640 = vrot.lane.b32.xlu0 %v481_v47, %s3342_s25  ;;  %3081 = vmatprep.subr.bf16.mxu0 %v481_v47 }
 0x1ff   :  { %3082 = vmatpush3.bf16.msra.mxu0 %v481_v47  ;;  %816 = vmatpush1.bf16.msra.mxu1 %v3276_v35 }
 0x200   :  { %3083 = vmatprep.subr.bf16.mxu0 %v482_v28  ;;  %817 = vmatprep.subr.bf16.mxu1 %v3343_v7 }
 0x203   :  { %3084 = vmatpush3.bf16.msra.mxu0 %v482_v28  ;;  %818 = vmatpush1.bf16.msra.mxu1 %v3277_v0 }
 0x204   :  { %819 = vmatprep.subr.bf16.mxu1 %v3343_v7 }
 0x206   :  { %3086 = vmatmul.mubr.bf16.vlgmr.msra.gmra.mrb[16].mxu0 %v3578_v52 }
 0x207   :  { %3089 = vmatprep.mubr.bf16.mxu0 %v3584_v53  ;;  %820 = vmatpush1.bf16.msra.mxu1 %v3278_v36 }
 0x208   :  { %821 = vmatprep.subr.bf16.mxu1 %v3343_v7 }
 0x20b   :  { %822 = vmatpush1.bf16.msra.mxu1 %v3279_v2 }
 0x20c   :  { %823 = vmatprep.subr.bf16.mxu1 %v3343_v7 }
 0x20e   :  { %3090 = vmatmul.mubr.bf16.gmra.mrb[20].mxu0 %v3591_v54 }
 0x20f   :  { %3093 = vmatprep.mubr.bf16.mxu0 %v3596_v55  ;;  %824 = vmatpush1.bf16.msra.mxu1 %v3280_v39 }
 0x210   :  { %825 = vmatprep.subr.bf16.mxu1 %v3343_v7 }
 0x213   :  { %826 = vmatpush1.bf16.msra.mxu1 %v3281_v45 }
 0x214   :  { %1565 = vmatprep.subr.bf16.mxu1 %v3343_v7 }
 0x216   :  { %3094 = vmatmul.mubr.bf16.gmra.mrb[24].mxu0 %v3603_v56 }
 0x217   :  { %3097 = vmatprep.mubr.bf16.mxu0 %v3608_v57 }
 0x21e   :  { %3098 = vmatmul.mubr.bf16.gmra.mrb[28].mxu0 %v3615_v58 }
 0x257   :  { %v629_v19 = vpop.permute.xlu0 %628 }
 0x258   :  { %v647_v37 = vsel %vm644_vm2, %v3510_v21, %v629_v19 }
 0x25b   :  { %v631_v61 = vpop.permute.xlu0 %630 }
 0x2d9   :  { %v3087_v6 = vpop.f32.mrb[16].mxu0 }
 0x2da   :  { %v582_v46 = vmul.f32 0.95, %v3087_v6  ;;  %v517_v8 = vpop.f32.mrb[17].mxu0  ;;  %v651_v6 = vsel %vm644_vm2, %v3506_v20, %v631_v61 }
 0x2db   :  { %v580_v9 = vmul.f32 0.95, %v517_v8  ;;  %v3088_v11 = vpop.f32.mrb[18].mxu0 }
 0x2dc   :  { %v583_v12 = vmul.f32 0.95, %v3088_v11  ;;  %v520_v13 = vpop.f32.mrb[19].mxu0  ;;  %v598_v15 = vadd.f32 %v582_v46, %v3619_v62  ;;  %v633_v11 = vpop.permute.xlu1 %632 }
 0x2dd   :  { %v581_v14 = vmul.f32 0.95, %v520_v13  ;;  %v596_v16 = vadd.f32 %v580_v9, %v3625_v4 }
 0x2de   :  { %v599_v49 = vadd.f32 %v583_v12, %v3622_v1 }
 0x2df   :  { %v597_v18 = vadd.f32 %v581_v14, %v3628_v5 }
 0x2e0   :  { %v613_v23 = vpack.c.bf16 %v599_v49, %v598_v15 }
 0x2e1   :  { %v612_v24 = vpack.c.bf16 %v597_v18, %v596_v16  ;;  %v3091_v25 = vpop.f32.mrb[20].mxu0  ;;  %v655_v18 = vsel %vm644_vm2, %v3530_v31, %v633_v11 }
 0x2e2   :  { %v586_v33 = vmul.f32 0.95, %v3091_v25  ;;  %v533_v34 = vpop.f32.mrb[21].mxu0  ;;  %v635_v25 = vpop.permute.xlu1 %634 }
 0x2e3   :  { %v584_v26 = vmul.f32 0.95, %v533_v34  ;;  %v3092_v28 = vpop.f32.mrb[22].mxu0  ;;  %2789 = vmatprep.mubr.msk.bf16.mxu1 %vm644_vm2, %v612_v24  ;;  %v659_v31 = vsel %vm644_vm2, %v3525_v30, %v635_v25 }
 0x2e4   :  { %v587_v62 = vmul.f32 0.95, %v3092_v28  ;;  %v536_v44 = vpop.f32.mrb[23].mxu0  ;;  %836 = vmatmul.mubr.bf16.vlgmr.msra.gmra.mrb[16].mxu1 %v647_v37  ;;  %v602_v4 = vadd.f32 %v586_v33, %v3635_v17  ;;  %v637_v37 = vpop.permute.xlu0 %636  ;;  %v3282_v28 = vld [vmem:[%s4397_s6] sm:$0xff]  }
 0x2e5   :  { %v585_v1 = vmul.f32 0.95, %v536_v44  ;;  %2790 = vmatprep.mubr.msk.bf16.mxu1 %vm644_vm2, %v613_v23  ;;  %v600_v47 = vadd.f32 %v584_v26, %v3642_v27  ;;  %v663_v26 = vsel %vm644_vm2, %v3550_v41, %v637_v37  ;;  %3101 = vmatprep.subr.bf16.mxu0 %v3282_v28 }
 0x2e6   :  { %v603_v5 = vadd.f32 %v587_v62, %v3639_v22  ;;  %3102 = vmatpush3.bf16.msra.mxu0 %v3282_v28  ;;  %v3805_v62 = vld [vmem:[%s4398_s5] ss:$0 sm:$0xff] }
 0x2e7   :  { %v601_v60 = vadd.f32 %v585_v1, %v3645_v32 }
 0x2e8   :  { %v615_v21 = vpack.c.bf16 %v603_v5, %v602_v4 }
 0x2e9   :  { %v614_v35 = vpack.c.bf16 %v601_v60, %v600_v47  ;;  %v3095_v0 = vpop.f32.mrb[24].mxu0 }
 0x2ea   :  { %v590_v36 = vmul.f32 0.95, %v3095_v0  ;;  %v549_v2 = vpop.f32.mrb[25].mxu0 }
 0x2eb   :  { %v588_v39 = vmul.f32 0.95, %v549_v2  ;;  %v3096_v45 = vpop.f32.mrb[26].mxu0 }
 0x2ec   :  { %v591_v46 = vmul.f32 0.95, %v3096_v45  ;;  %v552_v8 = vpop.f32.mrb[27].mxu0  ;;  %844 = vmatmul.mubr.bf16.gmra.mrb[20].mxu1 %v651_v6  ;;  %v606_v22 = vadd.f32 %v590_v36, %v3653_v42 }
 0x2ed   :  { %v589_v17 = vmul.f32 0.95, %v552_v8  ;;  %2791 = vmatprep.mubr.msk.bf16.mxu1 %vm644_vm2, %v614_v35  ;;  %v604_v32 = vadd.f32 %v588_v39, %v3656_v29 }
 0x2ee   :  { %v607_v27 = vadd.f32 %v591_v46, %v3659_v43 }
 0x2ef   :  { %v605_v9 = vadd.f32 %v589_v17, %v3662_v59 }
 0x2f0   :  { %v617_v12 = vpack.c.bf16 %v607_v27, %v606_v22 }
 0x2f1   :  { %v616_v13 = vpack.c.bf16 %v605_v9, %v604_v32  ;;  %v3099_v14 = vpop.f32.mrb[28].mxu0 }
 0x2f2   :  { %v594_v15 = vmul.f32 0.95, %v3099_v14  ;;  %v565_v20 = vpop.f32.mrb[29].mxu0 }
 0x2f3   :  { %v592_v49 = vmul.f32 0.95, %v565_v20  ;;  %v3100_v16 = vpop.f32.mrb[30].mxu0 }
 0x2f4   :  { %v595_v19 = vmul.f32 0.95, %v3100_v16  ;;  %v568_v23 = vpop.f32.mrb[31].mxu0  ;;  %852 = vmatmul.mubr.bf16.gmra.mrb[24].mxu1 %v655_v18  ;;  %v610_v29 = vadd.f32 %v594_v15, %v3665_v63  ;;  %v639_v63 = vpop.permute.xlu1 %638 }
 0x2f5   :  { %v593_v42 = vmul.f32 0.95, %v568_v23  ;;  %2792 = vmatprep.mubr.msk.bf16.mxu1 %vm644_vm2, %v615_v21  ;;  %v608_v59 = vadd.f32 %v592_v49, %v3669_v38  ;;  %v667_v38 = vsel %vm644_vm2, %v3545_v40, %v639_v63  ;;  %v3283_v40 = vld [vmem:[%s4397_s6 + $0x8] sm:$0xff]  }
 0x2f6   :  { %v611_v43 = vadd.f32 %v595_v19, %v3672_v3  ;;  %v641_v3 = vpop.permute.xlu0 %640  ;;  %3103 = vmatprep.subr.bf16.mxu0 %v3283_v40 }
 0x2f7   :  { %v609_v24 = vadd.f32 %v593_v42, %v3685_v48  ;;  %v671_v30 = vsel %vm644_vm2, %v3570_v51, %v641_v3  ;;  %3104 = vmatpush3.bf16.msra.mxu0 %v3283_v40  ;;  %v3284_v51 = vld [vmem:[%s4397_s6 + $0x10] sm:$0xff]  }
 0x2f8   :  { %v619_v33 = vpack.c.bf16 %v611_v43, %v610_v29  ;;  %v643_v48 = vpop.permute.xlu1 %642  ;;  %3105 = vmatprep.subr.bf16.mxu0 %v3284_v51 }
 0x2f9   :  { %v618_v34 = vpack.c.bf16 %v609_v24, %v608_v59  ;;  %v675_v41 = vsel %vm644_vm2, %v3565_v50, %v643_v48  ;;  %v3285_v50 = vld [vmem:[%s4397_s6 + $0x18] sm:$0xff]  }
 0x2fb   :  { %3106 = vmatpush3.bf16.msra.mxu0 %v3284_v51 }
 0x2fc   :  { %860 = vmatmul.mubr.bf16.gmra.mrb[28].mxu1 %v659_v31  ;;  %3107 = vmatprep.subr.bf16.mxu0 %v3285_v50 }
 0x2fd   :  { %2793 = vmatprep.mubr.msk.bf16.mxu1 %vm644_vm2, %v616_v13 }
 0x2ff   :  { %3108 = vmatpush3.bf16.msra.mxu0 %v3285_v50 }
 0x304   :  { %868 = vmatmul.mubr.bf16.gmra.mrb[32].mxu1 %v663_v26 }
 0x305   :  { %2794 = vmatprep.mubr.msk.bf16.mxu1 %vm644_vm2, %v617_v12 }
 0x30c   :  { %876 = vmatmul.mubr.bf16.gmra.mrb[36].mxu1 %v667_v38 }
 0x30d   :  { %2795 = vmatprep.mubr.msk.bf16.mxu1 %vm644_vm2, %v618_v34 }
 0x314   :  { %884 = vmatmul.mubr.bf16.gmra.mrb[40].mxu1 %v671_v30 }
 0x315   :  { %2796 = vmatprep.mubr.msk.bf16.mxu1 %vm644_vm2, %v619_v33 }
 0x31c   :  { %892 = vmatmul.mubr.bf16.gmra.mrb[44].mxu1 %v675_v41 }
 0x3b7   :  { %v837_v44 = vpop.f32.mrb[16].mxu1 }
 0x3b8   :  { %v838_v1 = vadd.f32 %v3805_v62, %v837_v44  ;;  %v839_v4 = vpop.f32.mrb[17].mxu1 }
 0x3b9   :  { %v840_v5 = vpop.f32.mrb[18].mxu1 }
 0x3ba   :  { %v841_v47 = vadd.f32 %v3805_v62, %v840_v5  ;;  %v842_v60 = vpop.f32.mrb[19].mxu1  ;;  %v900_v61 = vmax.f32 %v838_v1, 0.0 }
 0x3bc   :  { %v901_v21 = vmax.f32 %v841_v47, 0.0 }
 0x3be   :  { %v916_v35 = vpack.c.bf16 %v901_v21, %v900_v61 }
 0x3bf   :  { %v845_v0 = vpop.f32.mrb[20].mxu1 }
 0x3c0   :  { %v846_v36 = vadd.f32 %v3805_v62, %v845_v0  ;;  %v847_v2 = vpop.f32.mrb[21].mxu1  ;;  %3109 = vmatprep.mubr.msk.bf16.mxu0 %vm644_vm2, %v916_v35 }
 0x3c1   :  { %v848_v39 = vpop.f32.mrb[22].mxu1 }
 0x3c2   :  { %v849_v45 = vadd.f32 %v3805_v62, %v848_v39  ;;  %v850_v6 = vpop.f32.mrb[23].mxu1  ;;  %v902_v46 = vmax.f32 %v846_v36, 0.0 }
 0x3c4   :  { %v903_v8 = vmax.f32 %v849_v45, 0.0 }
 0x3c6   :  { %v917_v17 = vpack.c.bf16 %v903_v8, %v902_v46 }
 0x3c7   :  { %v853_v22 = vpop.f32.mrb[24].mxu1 }
 0x3c8   :  { %v854_v27 = vadd.f32 %v3805_v62, %v853_v22  ;;  %v855_v32 = vpop.f32.mrb[25].mxu1  ;;  %3110 = vmatmul.mubr.msk.bf16.vlgmr.msra.gmra.mrb[32].mxu0 %vm644_vm2, %v917_v17 }
 0x3c9   :  { %v856_v9 = vpop.f32.mrb[26].mxu1 }
 0x3ca   :  { %v857_v11 = vadd.f32 %v3805_v62, %v856_v9  ;;  %v858_v12 = vpop.f32.mrb[27].mxu1  ;;  %v904_v13 = vmax.f32 %v854_v27, 0.0  ;;  %v2797_v27 = vld [vmem:[%s4399_s7] ss:$0 sm:$0xff] }
 0x3cc   :  { %v905_v14 = vmax.f32 %v857_v11, 0.0 }
 0x3ce   :  { %v918_v15 = vpack.c.bf16 %v905_v14, %v904_v13 }
 0x3cf   :  { %v861_v20 = vpop.f32.mrb[28].mxu1 }
 0x3d0   :  { %v862_v49 = vadd.f32 %v3805_v62, %v861_v20  ;;  %v863_v16 = vpop.f32.mrb[29].mxu1  ;;  %3113 = vmatprep.mubr.msk.bf16.mxu0 %vm644_vm2, %v918_v15 }
 0x3d1   :  { %v864_v18 = vpop.f32.mrb[30].mxu1 }
 0x3d2   :  { %v865_v19 = vadd.f32 %v3805_v62, %v864_v18  ;;  %v866_v23 = vpop.f32.mrb[31].mxu1  ;;  %v906_v42 = vmax.f32 %v862_v49, 0.0 }
 0x3d4   :  { %v907_v29 = vmax.f32 %v865_v19, 0.0 }
 0x3d6   :  { %v919_v43 = vpack.c.bf16 %v907_v29, %v906_v42 }
 0x3d7   :  { %v869_v59 = vpop.f32.mrb[32].mxu1 }
 0x3d8   :  { %v870_v24 = vadd.f32 %v3805_v62, %v869_v59  ;;  %v871_v25 = vpop.f32.mrb[33].mxu1  ;;  %3114 = vmatmul.mubr.msk.bf16.gmra.mrb[36].mxu0 %vm644_vm2, %v919_v43 }
 0x3d9   :  { %v872_v33 = vpop.f32.mrb[34].mxu1 }
 0x3da   :  { %v873_v34 = vadd.f32 %v3805_v62, %v872_v33  ;;  %v874_v31 = vpop.f32.mrb[35].mxu1  ;;  %v908_v37 = vmax.f32 %v870_v24, 0.0 }
 0x3dc   :  { %v909_v26 = vmax.f32 %v873_v34, 0.0 }
 0x3de   :  { %v920_v63 = vpack.c.bf16 %v909_v26, %v908_v37 }
 0x3df   :  { %v877_v38 = vpop.f32.mrb[36].mxu1 }
 0x3e0   :  { %v878_v3 = vadd.f32 %v3805_v62, %v877_v38  ;;  %v879_v30 = vpop.f32.mrb[37].mxu1  ;;  %3117 = vmatprep.mubr.msk.bf16.mxu0 %vm644_vm2, %v920_v63 }
 0x3e1   :  { %v880_v48 = vpop.f32.mrb[38].mxu1 }
 0x3e2   :  { %v881_v41 = vadd.f32 %v3805_v62, %v880_v48  ;;  %v882_v28 = vpop.f32.mrb[39].mxu1  ;;  %v910_v40 = vmax.f32 %v878_v3, 0.0 }
 0x3e4   :  { %v911_v51 = vmax.f32 %v881_v41, 0.0 }
 0x3e6   :  { %v921_v50 = vpack.c.bf16 %v911_v51, %v910_v40 }
 0x3e7   :  { %v885_v44 = vpop.f32.mrb[40].mxu1 }
 0x3e8   :  { %v886_v1 = vadd.f32 %v3805_v62, %v885_v44  ;;  %v887_v4 = vpop.f32.mrb[41].mxu1  ;;  %3118 = vmatmul.mubr.msk.bf16.gmra.mrb[40].mxu0 %vm644_vm2, %v921_v50 }
 0x3e9   :  { %v888_v5 = vpop.f32.mrb[42].mxu1 }
 0x3ea   :  { %v889_v47 = vadd.f32 %v3805_v62, %v888_v5  ;;  %v890_v60 = vpop.f32.mrb[43].mxu1  ;;  %v912_v61 = vmax.f32 %v886_v1, 0.0  ;;  %v3334_v5 = vld [vmem:[%s4423_s27] sm:$0xff]  }
 0x3ec   :  { %v913_v21 = vmax.f32 %v889_v47, 0.0 }
 0x3ee   :  { %v922_v35 = vpack.c.bf16 %v913_v21, %v912_v61 }
 0x3ef   :  { %v893_v0 = vpop.f32.mrb[44].mxu1 }
 0x3f0   :  { %v894_v36 = vadd.f32 %v3805_v62, %v893_v0  ;;  %v895_v2 = vpop.f32.mrb[45].mxu1  ;;  %3121 = vmatprep.mubr.msk.bf16.mxu0 %vm644_vm2, %v922_v35 }
 0x3f1   :  { %v896_v39 = vpop.f32.mrb[46].mxu1 }
 0x3f2   :  { %v897_v45 = vadd.f32 %v3805_v62, %v896_v39  ;;  %v898_v6 = vpop.f32.mrb[47].mxu1  ;;  %v914_v46 = vmax.f32 %v894_v36, 0.0 }
 0x3f4   :  { %v915_v8 = vmax.f32 %v897_v45, 0.0 }
 0x3f6   :  { %v923_v17 = vpack.c.bf16 %v915_v8, %v914_v46 }
 0x3f8   :  { %3122 = vmatmul.mubr.msk.bf16.gmra.mrb[44].mxu0 %vm644_vm2, %v923_v17 }
 0x3f9   :  { %3141 = vmatprep.mubr.bf16.mxu0 %v3489_v10 }
 0x49b   :  { %v3111_v22 = vpop.f32.mrb[32].mxu0 }
 0x49c   :  { %v1020_v32 = vpop.f32.mrb[33].mxu0  ;;  %v3835_v11 = vadd.f32 %v3111_v22, %v2797_v27 }
 0x49d   :  { %v3112_v9 = vpop.f32.mrb[34].mxu0  ;;  %v3839_v13 = vadd.f32 %v2797_v27, %v1020_v32 }
 0x49e   :  { %v3837_v12 = vadd.f32 %v3112_v9, %v2797_v27  ;;  %v1023_v62 = vpop.f32.mrb[35].mxu0 }
 0x49f   :  { %v3841_v14 = vadd.f32 %v2797_v27, %v1023_v62 }
 0x4a0   :  { %v3845_v15 = vpack.c.bf16 %v3837_v12, %v3835_v11 }
 0x4a1   :  { %v3849_v10 = vpack.c.bf16 %v3841_v14, %v3839_v13  ;;  %v3935_v21 = vmul.f32 0.05, %v3841_v14 }
 0x4a3   :  { %3125 = vmatprep.subr.bf16.mxu0 %v3849_v10 }
 0x4a4   :  { %3126 = vmatpush3.bf16.msra.mxu0 %v3849_v10 }
 0x4a5   :  { %3127 = vmatprep.subr.bf16.mxu0 %v3845_v15 }
 0x4a8   :  { %3128 = vmatpush3.bf16.msra.mxu0 %v3845_v15 }
 0x4ab   :  { %v3115_v20 = vpop.f32.mrb[36].mxu0 }
 0x4ac   :  { %v1036_v49 = vpop.f32.mrb[37].mxu0  ;;  %v3855_v18 = vadd.f32 %v3115_v20, %v2797_v27 }
 0x4ad   :  { %v3116_v16 = vpop.f32.mrb[38].mxu0  ;;  %v3859_v42 = vadd.f32 %v2797_v27, %v1036_v49 }
 0x4ae   :  { %v3857_v19 = vadd.f32 %v3116_v16, %v2797_v27  ;;  %v1039_v23 = vpop.f32.mrb[39].mxu0  ;;  %v3943_v22 = vmul.f32 0.05, %v3855_v18 }
 0x4af   :  { %v3861_v29 = vadd.f32 %v2797_v27, %v1039_v23  ;;  %v3950_v62 = vmul.f32 0.05, %v3859_v42 }
 0x4b0   :  { %v3865_v43 = vpack.c.bf16 %v3857_v19, %v3855_v18  ;;  %v3947_v9 = vmul.f32 0.05, %v3857_v19 }
 0x4b1   :  { %v3869_v59 = vpack.c.bf16 %v3861_v29, %v3859_v42 }
 0x4b3   :  { %3129 = vmatprep.subr.bf16.mxu0 %v3869_v59 }
 0x4b4   :  { %3130 = vmatpush3.bf16.msra.mxu0 %v3869_v59 }
 0x4b5   :  { %3131 = vmatprep.subr.bf16.mxu0 %v3865_v43 }
 0x4b8   :  { %3132 = vmatpush3.bf16.msra.mxu0 %v3865_v43 }
 0x4bb   :  { %v3119_v24 = vpop.f32.mrb[40].mxu0 }
 0x4bc   :  { %v1052_v25 = vpop.f32.mrb[41].mxu0  ;;  %v3875_v34 = vadd.f32 %v3119_v24, %v2797_v27 }
 0x4bd   :  { %v3120_v33 = vpop.f32.mrb[42].mxu0  ;;  %v3879_v26 = vadd.f32 %v2797_v27, %v1052_v25 }
 0x4be   :  { %v3877_v31 = vadd.f32 %v3120_v33, %v2797_v27  ;;  %v1055_v37 = vpop.f32.mrb[43].mxu0  ;;  %v3960_v23 = vmul.f32 0.05, %v3875_v34 }
 0x4bf   :  { %v3881_v63 = vadd.f32 %v2797_v27, %v1055_v37  ;;  %v3963_v42 = vmul.f32 0.05, %v3879_v26 }
 0x4c0   :  { %v3885_v38 = vpack.c.bf16 %v3877_v31, %v3875_v34  ;;  %v3966_v25 = vmul.f32 0.05, %v3877_v31 }
 0x4c1   :  { %v3889_v3 = vpack.c.bf16 %v3881_v63, %v3879_v26 }
 0x4c3   :  { %3133 = vmatprep.subr.bf16.mxu0 %v3889_v3 }
 0x4c4   :  { %3134 = vmatpush3.bf16.msra.mxu0 %v3889_v3 }
 0x4c5   :  { %3135 = vmatprep.subr.bf16.mxu0 %v3885_v38 }
 0x4c8   :  { %3136 = vmatpush3.bf16.msra.mxu0 %v3885_v38 }
 0x4cb   :  { %v3123_v30 = vpop.f32.mrb[44].mxu0 }
 0x4cc   :  { %v1068_v48 = vpop.f32.mrb[45].mxu0  ;;  %v3895_v28 = vadd.f32 %v3123_v30, %v2797_v27  ;;  %v3970_v30 = vmul.f32 0.05, %v3881_v63 }
 0x4cd   :  { %v3124_v41 = vpop.f32.mrb[46].mxu0  ;;  %v3899_v50 = vadd.f32 %v2797_v27, %v1068_v48 }
 0x4ce   :  { %v3897_v40 = vadd.f32 %v3124_v41, %v2797_v27  ;;  %v1071_v51 = vpop.f32.mrb[47].mxu0  ;;  %v3974_v26 = vmul.f32 0.05, %v3895_v28 }
 0x4cf   :  { %v3901_v44 = vadd.f32 %v2797_v27, %v1071_v51  ;;  %v3977_v31 = vmul.f32 0.05, %v3899_v50 }
 0x4d0   :  { %v3905_v1 = vpack.c.bf16 %v3897_v40, %v3895_v28  ;;  %v3286_v28 = vld [vmem:[%s4400_s8] sm:$0xff]  }
 0x4d1   :  { %v3909_v4 = vpack.c.bf16 %v3901_v44, %v3899_v50  ;;  %1566 = vmatpush1.bf16.msra.mxu1 %v3286_v28 }
 0x4d2   :  { %1567 = vmatprep.subr.bf16.mxu1 %v3343_v7 }
 0x4d3   :  { %3137 = vmatprep.subr.bf16.mxu0 %v3909_v4 }
 0x4d4   :  { %3138 = vmatpush3.bf16.msra.mxu0 %v3909_v4 }
 0x4d5   :  { %3139 = vmatprep.subr.bf16.mxu0 %v3905_v1 }
 0x4d8   :  { %3140 = vmatpush3.bf16.msra.mxu0 %v3905_v1 }
 0x4db   :  { %3142 = vmatmul.mubr.bf16.vlgmr.msra.gmra.mrb[48].mxu0 %v3578_v52 }
 0x4dc   :  { %3145 = vmatprep.mubr.bf16.mxu0 %v3584_v53  ;;  %v3926_v53 = vmul.f32 0.05, %v3835_v11 }
 0x4e3   :  { %3146 = vmatmul.mubr.bf16.gmra.mrb[52].mxu0 %v3591_v54 }
 0x4e4   :  { %3149 = vmatprep.mubr.bf16.mxu0 %v3596_v55  ;;  %v3929_v55 = vmul.f32 0.05, %v3837_v12 }
 0x4eb   :  { %3150 = vmatmul.mubr.bf16.gmra.mrb[56].mxu0 %v3603_v56 }
 0x4ec   :  { %3153 = vmatprep.mubr.bf16.mxu0 %v3608_v57 }
 0x4f3   :  { %3154 = vmatmul.mubr.bf16.gmra.mrb[60].mxu0 %v3615_v58  ;;  %v3932_v58 = vmul.f32 0.05, %v3839_v13  ;;  %v3953_v13 = vmul.f32 0.05, %v3861_v29 }
 0x4f4   :  { %3173 = vmatprep.mubr.bf16.mxu0 %v3334_v5  ;;  %v3980_v5 = vmul.f32 0.05, %v3897_v40 }
 0x5ae   :  { %v3143_v47 = vpop.f32.mrb[48].mxu0 }
 0x5af   :  { %v1208_v60 = vmul.f32 0.95, %v3143_v47  ;;  %v1143_v52 = vpop.f32.mrb[49].mxu0 }
 0x5b0   :  { %v1206_v54 = vmul.f32 0.95, %v1143_v52  ;;  %v3144_v61 = vpop.f32.mrb[50].mxu0  ;;  %v3988_v52 = vmul.f32 0.05, %v3901_v44 }
 0x5b1   :  { %v1209_v56 = vmul.f32 0.95, %v3144_v61  ;;  %v1146_v57 = vpop.f32.mrb[51].mxu0  ;;  %v1224_v0 = vadd.f32 %v1208_v60, %v3926_v53  ;;  %v3287_v61 = vld [vmem:[%s4400_s8 + $0x8] sm:$0xff]  }
 0x5b2   :  { %v1207_v35 = vmul.f32 0.95, %v1146_v57  ;;  %v1222_v2 = vadd.f32 %v1206_v54, %v3932_v58  ;;  %1568 = vmatpush1.bf16.msra.mxu1 %v3287_v61 }
 0x5b3   :  { %v1225_v36 = vadd.f32 %v1209_v56, %v3929_v55  ;;  %1569 = vmatprep.subr.bf16.mxu1 %v3343_v7 }
 0x5b4   :  { %v1223_v39 = vadd.f32 %v1207_v35, %v3935_v21 }
 0x5b5   :  { %v1239_v45 = vpack.c.bf16 %v1225_v36, %v1224_v0 }
 0x5b6   :  { %v3147_v6 = vpop.f32.mrb[52].mxu0  ;;  %v1238_v46 = vpack.c.bf16 %v1223_v39, %v1222_v2 }
 0x5b7   :  { %v1212_v8 = vmul.f32 0.95, %v3147_v6  ;;  %1393 = vrot.lane.b32.xlu1 %v1239_v45, %s3342_s25  ;;  %v1159_v17 = vpop.f32.mrb[53].mxu0 }
 0x5b8   :  { %v1210_v27 = vmul.f32 0.95, %v1159_v17  ;;  %1391 = vrot.lane.b32.xlu0 %v1238_v46, %s3342_s25  ;;  %v3148_v32 = vpop.f32.mrb[54].mxu0  ;;  %3157 = vmatprep.subr.bf16.mxu0 %v1238_v46 }
 0x5b9   :  { %v1213_v11 = vmul.f32 0.95, %v3148_v32  ;;  %v1162_v12 = vpop.f32.mrb[55].mxu0  ;;  %3158 = vmatpush3.bf16.msra.mxu0 %v1238_v46  ;;  %v1228_v20 = vadd.f32 %v1212_v8, %v3943_v22 }
 0x5ba   :  { %v1211_v14 = vmul.f32 0.95, %v1162_v12  ;;  %3159 = vmatprep.subr.bf16.mxu0 %v1239_v45  ;;  %v1226_v16 = vadd.f32 %v1210_v27, %v3950_v62 }
 0x5bb   :  { %v1229_v49 = vadd.f32 %v1213_v11, %v3947_v9  ;;  %v3289_v11 = vld [vmem:[%s4400_s8 + $0x18] sm:$0xff]  }
 0x5bc   :  { %v1227_v18 = vadd.f32 %v1211_v14, %v3953_v13  ;;  %v3290_v14 = vld [vmem:[%s4400_s8 + $0x20] sm:$0xff]  }
 0x5bd   :  { %3160 = vmatpush3.bf16.msra.mxu0 %v1239_v45  ;;  %v1241_v19 = vpack.c.bf16 %v1229_v49, %v1228_v20  ;;  %v3288_v45 = vld [vmem:[%s4400_s8 + $0x10] sm:$0xff]   ;;  %v3291_v20 = vld [vmem:[%s4400_s8 + $0x28] sm:$0xff]  }
 0x5be   :  { %v3151_v29 = vpop.f32.mrb[56].mxu0  ;;  %v1240_v24 = vpack.c.bf16 %v1227_v18, %v1226_v16  ;;  %1570 = vmatpush1.bf16.msra.mxu1 %v3288_v45  ;;  %v3335_v49 = vld [vmem:[%s4423_s27 + $0x8] sm:$0xff]   ;;  %v3336_v16 = vld [vmem:[%s4423_s27 + $0x10] sm:$0xff]  }
 0x5bf   :  { %v1216_v33 = vmul.f32 0.95, %v3151_v29  ;;  %1397 = vrot.lane.b32.xlu1 %v1241_v19, %s3342_s25  ;;  %v1175_v37 = vpop.f32.mrb[57].mxu0  ;;  %1571 = vmatprep.subr.bf16.mxu1 %v3343_v7  ;;  %v3292_v18 = vld [vmem:[%s4400_s8 + $0x30] sm:$0xff]   ;;  %v3337_v29 = vld [vmem:[%s4423_s27 + $0x18] sm:$0xff]  }
 0x5c0   :  { %v1214_v48 = vmul.f32 0.95, %v1175_v37  ;;  %1395 = vrot.lane.b32.xlu0 %v1240_v24, %s3342_s25  ;;  %v3152_v34 = vpop.f32.mrb[58].mxu0  ;;  %3161 = vmatprep.subr.bf16.mxu0 %v1240_v24  ;;  %v3295_v37 = vld [vmem:[%s4400_s8 + $0x48] sm:$0xff]  }
 0x5c1   :  { %v1217_v41 = vmul.f32 0.95, %v3152_v34  ;;  %v1178_v51 = vpop.f32.mrb[59].mxu0  ;;  %3162 = vmatpush3.bf16.msra.mxu0 %v1240_v24  ;;  %v1232_v63 = vadd.f32 %v1216_v33, %v3960_v23  ;;  %v3338_v24 = vld [vmem:[%s4423_s27 + $0x20] sm:$0xff]   ;;  %v3340_v34 = vld [vmem:[%s4423_s27 + $0x30] sm:$0xff]  }
 0x5c2   :  { %v1215_v47 = vmul.f32 0.95, %v1178_v51  ;;  %3163 = vmatprep.subr.bf16.mxu0 %v1241_v19  ;;  %v1230_v54 = vadd.f32 %v1214_v48, %v3963_v42  ;;  %1572 = vmatpush1.bf16.msra.mxu1 %v3289_v11  ;;  %v3294_v33 = vld [vmem:[%s4400_s8 + $0x40] sm:$0xff]   ;;  %v3339_v48 = vld [vmem:[%s4423_s27 + $0x28] sm:$0xff]   ;;  %v3296_v51 = vld [vmem:[%s4400_s8 + $0x50] sm:$0xff]  }
 0x5c3   :  { %v1233_v60 = vadd.f32 %v1217_v41, %v3966_v25  ;;  %1573 = vmatprep.subr.bf16.mxu1 %v3343_v7  ;;  %v3341_v41 = vld [vmem:[%s4423_s27 + $0x38] sm:$0xff]  }
 0x5c4   :  { %v1231_v50 = vadd.f32 %v1215_v47, %v3970_v30  ;;  %v3297_v47 = vld [vmem:[%s4400_s8 + $0x58] sm:$0xff]  }
 0x5c5   :  { %3164 = vmatpush3.bf16.msra.mxu0 %v1241_v19  ;;  %v1243_v40 = vpack.c.bf16 %v1233_v60, %v1232_v63  ;;  %v3293_v19 = vld [vmem:[%s4400_s8 + $0x38] sm:$0xff]   ;;  %v3298_v63 = vld [vmem:[%s4401_s10] sm:$0xff]   ;;  %v3299_v60 = vld [vmem:[%s4401_s10 + $0x8] sm:$0xff]  }
 0x5c6   :  { %v3155_v56 = vpop.f32.mrb[60].mxu0  ;;  %v1242_v57 = vpack.c.bf16 %v1231_v50, %v1230_v54  ;;  %1574 = vmatpush1.bf16.msra.mxu1 %v3290_v14 }
 0x5c7   :  { %v1220_v35 = vmul.f32 0.95, %v3155_v56  ;;  %1401 = vrot.lane.b32.xlu1 %v1243_v40, %s3342_s25  ;;  %v1191_v44 = vpop.f32.mrb[61].mxu0  ;;  %1575 = vmatprep.subr.bf16.mxu1 %v3343_v7 }
 0x5c8   :  { %v1218_v0 = vmul.f32 0.95, %v1191_v44  ;;  %1399 = vrot.lane.b32.xlu0 %v1242_v57, %s3342_s25  ;;  %v3156_v36 = vpop.f32.mrb[62].mxu0  ;;  %3165 = vmatprep.subr.bf16.mxu0 %v1242_v57 }
 0x5c9   :  { %v1221_v2 = vmul.f32 0.95, %v3156_v36  ;;  %v1194_v39 = vpop.f32.mrb[63].mxu0  ;;  %3166 = vmatpush3.bf16.msra.mxu0 %v1242_v57  ;;  %v1236_v46 = vadd.f32 %v1220_v35, %v3974_v26 }
 0x5ca   :  { %v1219_v6 = vmul.f32 0.95, %v1194_v39  ;;  %3167 = vmatprep.subr.bf16.mxu0 %v1243_v40  ;;  %v1234_v17 = vadd.f32 %v1218_v0, %v3977_v31  ;;  %1576 = vmatpush1.bf16.msra.mxu1 %v3291_v20 }
 0x5cb   :  { %v1237_v8 = vadd.f32 %v1221_v2, %v3980_v5  ;;  %1577 = vmatprep.subr.bf16.mxu1 %v3343_v7 }
 0x5cc   :  { %v1235_v27 = vadd.f32 %v1219_v6, %v3988_v52 }
 0x5cd   :  { %3168 = vmatpush3.bf16.msra.mxu0 %v1243_v40  ;;  %v1245_v32 = vpack.c.bf16 %v1237_v8, %v1236_v46 }
 0x5ce   :  { %v1244_v12 = vpack.c.bf16 %v1235_v27, %v1234_v17  ;;  %1578 = vmatpush1.bf16.msra.mxu1 %v3292_v18 }
 0x5cf   :  { %1405 = vrot.lane.b32.xlu1 %v1245_v32, %s3342_s25  ;;  %1579 = vmatprep.subr.bf16.mxu1 %v3343_v7 }
 0x5d0   :  { %1403 = vrot.lane.b32.xlu0 %v1244_v12, %s3342_s25  ;;  %3169 = vmatprep.subr.bf16.mxu0 %v1244_v12 }
 0x5d1   :  { %3170 = vmatpush3.bf16.msra.mxu0 %v1244_v12 }
 0x5d2   :  { %3171 = vmatprep.subr.bf16.mxu0 %v1245_v32  ;;  %1580 = vmatpush1.bf16.msra.mxu1 %v3293_v19 }
 0x5d3   :  { %1581 = vmatprep.subr.bf16.mxu1 %v3343_v7 }
 0x5d5   :  { %3172 = vmatpush3.bf16.msra.mxu0 %v1245_v32 }
 0x5d6   :  { %1582 = vmatpush1.bf16.msra.mxu1 %v3294_v33  ;;  %3189 = vmatprep.subr.bf16.mxu0 %v3298_v63 }
 0x5d7   :  { %1583 = vmatprep.subr.bf16.mxu1 %v3343_v7 }
 0x5d8   :  { %3174 = vmatmul.mubr.bf16.vlgmr.msra.gmra.mrb[64].mxu0 %v3335_v49 }
 0x5d9   :  { %3177 = vmatprep.mubr.bf16.mxu0 %v3336_v16  ;;  %3190 = vmatpush3.bf16.msra.mxu0 %v3298_v63 }
 0x5da   :  { %1584 = vmatpush1.bf16.msra.mxu1 %v3295_v37  ;;  %3191 = vmatprep.subr.bf16.mxu0 %v3299_v60 }
 0x5db   :  { %1585 = vmatprep.subr.bf16.mxu1 %v3343_v7 }
 0x5dd   :  { %3192 = vmatpush3.bf16.msra.mxu0 %v3299_v60 }
 0x5de   :  { %1586 = vmatpush1.bf16.msra.mxu1 %v3296_v51 }
 0x5df   :  { %1587 = vmatprep.subr.bf16.mxu1 %v3343_v7 }
 0x5e0   :  { %3178 = vmatmul.mubr.bf16.gmra.mrb[68].mxu0 %v3337_v29 }
 0x5e1   :  { %3181 = vmatprep.mubr.bf16.mxu0 %v3338_v24 }
 0x5e2   :  { %1588 = vmatpush1.bf16.msra.mxu1 %v3297_v47 }
 0x5e3   :  { %2050 = vmatprep.subr.bf16.mxu1 %v3343_v7 }
 0x5e8   :  { %3182 = vmatmul.mubr.bf16.gmra.mrb[72].mxu0 %v3339_v48 }
 0x5e9   :  { %3185 = vmatprep.mubr.bf16.mxu0 %v3340_v34 }
 0x5f0   :  { %3186 = vmatmul.mubr.bf16.gmra.mrb[76].mxu0 %v3341_v41 }
 0x629   :  { %v1394_v49 = vpop.permute.xlu1 %1393 }
 0x62a   :  { %v1392_v39 = vpop.permute.xlu0 %1391  ;;  %v1413_v37 = vsel %vm644_vm2, %v3845_v15, %v1394_v49 }
 0x62b   :  { %v1409_v27 = vsel %vm644_vm2, %v3849_v10, %v1392_v39  ;;  %v3300_v39 = vld [vmem:[%s4401_s10 + $0x10] sm:$0xff]  }
 0x62c   :  { %3193 = vmatprep.subr.bf16.mxu0 %v3300_v39 }
 0x62d   :  { %3194 = vmatpush3.bf16.msra.mxu0 %v3300_v39 }
 0x632   :  { %v1396_v51 = vpop.permute.xlu0 %1395 }
 0x6ab   :  { %v3175_v28 = vpop.f32.mrb[64].mxu0 }
 0x6ac   :  { %v1345_v54 = vmul.f32 0.95, %v3175_v28  ;;  %v1280_v50 = vpop.f32.mrb[65].mxu0 }
 0x6ad   :  { %v1343_v40 = vmul.f32 0.95, %v1280_v50  ;;  %v3176_v61 = vpop.f32.mrb[66].mxu0 }
 0x6ae   :  { %v1346_v56 = vmul.f32 0.95, %v3176_v61  ;;  %v1283_v57 = vpop.f32.mrb[67].mxu0  ;;  %v1361_v44 = vadd.f32 %v1345_v54, %v3926_v53 }
 0x6af   :  { %v1344_v35 = vmul.f32 0.95, %v1283_v57  ;;  %v1359_v36 = vadd.f32 %v1343_v40, %v3932_v58  ;;  %v1417_v40 = vsel %vm644_vm2, %v3869_v59, %v1396_v51 }
 0x6b0   :  { %v1362_v0 = vadd.f32 %v1346_v56, %v3929_v55 }
 0x6b1   :  { %v1360_v2 = vadd.f32 %v1344_v35, %v3935_v21  ;;  %v1398_v35 = vpop.permute.xlu1 %1397 }
 0x6b2   :  { %v1376_v45 = vpack.c.bf16 %v1362_v0, %v1361_v44  ;;  %v1421_v59 = vsel %vm644_vm2, %v3865_v43, %v1398_v35 }
 0x6b3   :  { %v1375_v6 = vpack.c.bf16 %v1360_v2, %v1359_v36  ;;  %v3179_v46 = vpop.f32.mrb[68].mxu0  ;;  %v1400_v36 = vpop.permute.xlu0 %1399 }
 0x6b4   :  { %v1349_v8 = vmul.f32 0.95, %v3179_v46  ;;  %v1296_v17 = vpop.f32.mrb[69].mxu0  ;;  %v1425_v2 = vsel %vm644_vm2, %v3889_v3, %v1400_v36 }
 0x6b5   :  { %v1347_v32 = vmul.f32 0.95, %v1296_v17  ;;  %v3180_v11 = vpop.f32.mrb[70].mxu0  ;;  %2823 = vmatprep.mubr.msk.bf16.mxu1 %vm644_vm2, %v1375_v6 }
 0x6b6   :  { %v1350_v53 = vmul.f32 0.95, %v3180_v11  ;;  %v1299_v12 = vpop.f32.mrb[71].mxu0  ;;  %1598 = vmatmul.mubr.bf16.vlgmr.msra.gmra.mrb[48].mxu1 %v1409_v27  ;;  %v1365_v58 = vadd.f32 %v1349_v8, %v3943_v22 }
 0x6b7   :  { %v1348_v55 = vmul.f32 0.95, %v1299_v12  ;;  %2824 = vmatprep.mubr.msk.bf16.mxu1 %vm644_vm2, %v1376_v45  ;;  %v1363_v14 = vadd.f32 %v1347_v32, %v3950_v62 }
 0x6b8   :  { %v1366_v21 = vadd.f32 %v1350_v53, %v3947_v9 }
 0x6b9   :  { %v1364_v20 = vadd.f32 %v1348_v55, %v3953_v13 }
 0x6ba   :  { %v1378_v10 = vpack.c.bf16 %v1366_v21, %v1365_v58 }
 0x6bb   :  { %v1377_v16 = vpack.c.bf16 %v1364_v20, %v1363_v14  ;;  %v3183_v18 = vpop.f32.mrb[72].mxu0 }
 0x6bc   :  { %v1353_v19 = vmul.f32 0.95, %v3183_v18  ;;  %v1312_v29 = vpop.f32.mrb[73].mxu0 }
 0x6bd   :  { %v1351_v24 = vmul.f32 0.95, %v1312_v29  ;;  %v3184_v33 = vpop.f32.mrb[74].mxu0 }
 0x6be   :  { %v1354_v48 = vmul.f32 0.95, %v3184_v33  ;;  %v1315_v34 = vpop.f32.mrb[75].mxu0  ;;  %1606 = vmatmul.mubr.bf16.gmra.mrb[52].mxu1 %v1413_v37  ;;  %v1369_v9 = vadd.f32 %v1353_v19, %v3960_v23 }
 0x6bf   :  { %v1352_v22 = vmul.f32 0.95, %v1315_v34  ;;  %2825 = vmatprep.mubr.msk.bf16.mxu1 %vm644_vm2, %v1377_v16  ;;  %v1367_v13 = vadd.f32 %v1351_v24, %v3963_v42 }
 0x6c0   :  { %v1370_v62 = vadd.f32 %v1354_v48, %v3966_v25 }
 0x6c1   :  { %v1368_v41 = vadd.f32 %v1352_v22, %v3970_v30 }
 0x6c2   :  { %v1380_v47 = vpack.c.bf16 %v1370_v62, %v1369_v9 }
 0x6c3   :  { %v1379_v63 = vpack.c.bf16 %v1368_v41, %v1367_v13  ;;  %v3187_v60 = vpop.f32.mrb[76].mxu0 }
 0x6c4   :  { %v1357_v28 = vmul.f32 0.95, %v3187_v60  ;;  %v1328_v15 = vpop.f32.mrb[77].mxu0 }
 0x6c5   :  { %v1355_v54 = vmul.f32 0.95, %v1328_v15  ;;  %v3188_v50 = vpop.f32.mrb[78].mxu0 }
 0x6c6   :  { %v1358_v61 = vmul.f32 0.95, %v3188_v50  ;;  %v1331_v56 = vpop.f32.mrb[79].mxu0  ;;  %1614 = vmatmul.mubr.bf16.gmra.mrb[56].mxu1 %v1417_v40  ;;  %v1373_v42 = vadd.f32 %v1357_v28, %v3974_v26  ;;  %v1402_v26 = vpop.permute.xlu1 %1401 }
 0x6c7   :  { %v1356_v23 = vmul.f32 0.95, %v1331_v56  ;;  %2826 = vmatprep.mubr.msk.bf16.mxu1 %vm644_vm2, %v1378_v10  ;;  %v1371_v30 = vadd.f32 %v1355_v54, %v3977_v31  ;;  %v1429_v31 = vsel %vm644_vm2, %v3885_v38, %v1402_v26  ;;  %v3301_v38 = vld [vmem:[%s4401_s10 + $0x18] sm:$0xff]  }
 0x6c8   :  { %v1374_v25 = vadd.f32 %v1358_v61, %v3980_v5  ;;  %v1404_v5 = vpop.permute.xlu0 %1403  ;;  %3195 = vmatprep.subr.bf16.mxu0 %v3301_v38 }
 0x6c9   :  { %v1372_v57 = vadd.f32 %v1356_v23, %v3988_v52  ;;  %v1433_v43 = vsel %vm644_vm2, %v3909_v4, %v1404_v5  ;;  %3196 = vmatpush3.bf16.msra.mxu0 %v3301_v38  ;;  %v4122_v4 = vld [vmem:[%s4402_s9] ss:$0 sm:$0xff] }
 0x6ca   :  { %v1382_v44 = vpack.c.bf16 %v1374_v25, %v1373_v42  ;;  %v1406_v52 = vpop.permute.xlu1 %1405  ;;  %2366 = vmatprep.subr.bf16.mxu0 %v3343_v7 }
 0x6cb   :  { %v1381_v0 = vpack.c.bf16 %v1372_v57, %v1371_v30  ;;  %v1437_v3 = vsel %vm644_vm2, %v3905_v1, %v1406_v52 }
 0x6ce   :  { %1622 = vmatmul.mubr.bf16.gmra.mrb[60].mxu1 %v1421_v59 }
 0x6cf   :  { %2827 = vmatprep.mubr.msk.bf16.mxu1 %vm644_vm2, %v1379_v63 }
 0x6d6   :  { %1630 = vmatmul.mubr.bf16.gmra.mrb[64].mxu1 %v1425_v2 }
 0x6d7   :  { %2828 = vmatprep.mubr.msk.bf16.mxu1 %vm644_vm2, %v1380_v47 }
 0x6de   :  { %1638 = vmatmul.mubr.bf16.gmra.mrb[68].mxu1 %v1429_v31 }
 0x6df   :  { %2829 = vmatprep.mubr.msk.bf16.mxu1 %vm644_vm2, %v1381_v0 }
 0x6e6   :  { %1646 = vmatmul.mubr.bf16.gmra.mrb[72].mxu1 %v1433_v43 }
 0x6e7   :  { %2830 = vmatprep.mubr.msk.bf16.mxu1 %vm644_vm2, %v1382_v44 }
 0x6ee   :  { %1654 = vmatmul.mubr.bf16.gmra.mrb[76].mxu1 %v1437_v3 }
 0x789   :  { %v1599_v1 = vpop.f32.mrb[48].mxu1 }
 0x78a   :  { %v1600_v45 = vadd.f32 %v4122_v4, %v1599_v1  ;;  %v1601_v6 = vpop.f32.mrb[49].mxu1 }
 0x78b   :  { %v1602_v46 = vpop.f32.mrb[50].mxu1 }
 0x78c   :  { %v1603_v8 = vadd.f32 %v4122_v4, %v1602_v46  ;;  %v1604_v17 = vpop.f32.mrb[51].mxu1  ;;  %v1662_v27 = vmax.f32 %v1600_v45, 0.0 }
 0x78e   :  { %v1663_v32 = vmax.f32 %v1603_v8, 0.0 }
 0x790   :  { %v1678_v11 = vpack.c.bf16 %v1663_v32, %v1662_v27 }
 0x791   :  { %v1607_v53 = vpop.f32.mrb[52].mxu1 }
 0x792   :  { %v1608_v12 = vadd.f32 %v4122_v4, %v1607_v53  ;;  %v1609_v55 = vpop.f32.mrb[53].mxu1  ;;  %3197 = vmatprep.mubr.msk.bf16.mxu0 %vm644_vm2, %v1678_v11 }
 0x793   :  { %v1610_v58 = vpop.f32.mrb[54].mxu1  ;;  %v3303_v55 = vld [vmem:[%s4403_s12 + $0x8] sm:$0xff]  }
 0x794   :  { %v1611_v21 = vadd.f32 %v4122_v4, %v1610_v58  ;;  %v1612_v14 = vpop.f32.mrb[55].mxu1  ;;  %v1664_v20 = vmax.f32 %v1608_v12, 0.0  ;;  %v3302_v12 = vld [vmem:[%s4403_s12] sm:$0xff]   ;;  %v3305_v58 = vld [vmem:[%s4403_s12 + $0x18] sm:$0xff]  }
 0x795   :  { %2051 = vmatpush1.bf16.msra.mxu1 %v3302_v12  ;;  %v3307_v14 = vld [vmem:[%s4403_s12 + $0x28] sm:$0xff]  }
 0x796   :  { %v1665_v49 = vmax.f32 %v1611_v21, 0.0  ;;  %2052 = vmatprep.subr.bf16.mxu1 %v3343_v7  ;;  %v3306_v21 = vld [vmem:[%s4403_s12 + $0x20] sm:$0xff]  }
 0x798   :  { %v1679_v10 = vpack.c.bf16 %v1665_v49, %v1664_v20  ;;  %v3308_v20 = vld [vmem:[%s4403_s12 + $0x30] sm:$0xff]   ;;  %v3309_v49 = vld [vmem:[%s4403_s12 + $0x38] sm:$0xff]  }
 0x799   :  { %v1615_v16 = vpop.f32.mrb[56].mxu1  ;;  %2053 = vmatpush1.bf16.msra.mxu1 %v3303_v55 }
 0x79a   :  { %v1616_v18 = vadd.f32 %v4122_v4, %v1615_v16  ;;  %v1617_v19 = vpop.f32.mrb[57].mxu1  ;;  %3198 = vmatmul.mubr.msk.bf16.vlgmr.msra.gmra.mrb[80].mxu0 %vm644_vm2, %v1679_v10  ;;  %2054 = vmatprep.subr.bf16.mxu1 %v3343_v7  ;;  %v3310_v10 = vld [vmem:[%s4403_s12 + $0x40] sm:$0xff]   ;;  %v3311_v16 = vld [vmem:[%s4403_s12 + $0x48] sm:$0xff]  }
 0x79b   :  { %v1618_v29 = vpop.f32.mrb[58].mxu1  ;;  %v3313_v19 = vld [vmem:[%s4403_s12 + $0x58] sm:$0xff]  }
 0x79c   :  { %v1619_v24 = vadd.f32 %v4122_v4, %v1618_v29  ;;  %v1620_v33 = vpop.f32.mrb[59].mxu1  ;;  %v1666_v37 = vmax.f32 %v1616_v18, 0.0  ;;  %v3312_v18 = vld [vmem:[%s4403_s12 + $0x50] sm:$0xff]  }
 0x79e   :  { %v1667_v48 = vmax.f32 %v1619_v24, 0.0  ;;  %v2831_v24 = vld [vmem:[%s4404_s11] ss:$0 sm:$0xff] }
 0x7a0   :  { %v1680_v34 = vpack.c.bf16 %v1667_v48, %v1666_v37 }
 0x7a1   :  { %v1623_v22 = vpop.f32.mrb[60].mxu1 }
 0x7a2   :  { %v1624_v9 = vadd.f32 %v4122_v4, %v1623_v22  ;;  %v1625_v62 = vpop.f32.mrb[61].mxu1  ;;  %3201 = vmatprep.mubr.msk.bf16.mxu0 %vm644_vm2, %v1680_v34 }
 0x7a3   :  { %v1626_v13 = vpop.f32.mrb[62].mxu1 }
 0x7a4   :  { %v1627_v41 = vadd.f32 %v4122_v4, %v1626_v13  ;;  %v1628_v51 = vpop.f32.mrb[63].mxu1  ;;  %v1668_v47 = vmax.f32 %v1624_v9, 0.0 }
 0x7a6   :  { %v1669_v63 = vmax.f32 %v1627_v41, 0.0 }
 0x7a8   :  { %v1681_v60 = vpack.c.bf16 %v1669_v63, %v1668_v47 }
 0x7a9   :  { %v1631_v28 = vpop.f32.mrb[64].mxu1 }
 0x7aa   :  { %v1632_v15 = vadd.f32 %v4122_v4, %v1631_v28  ;;  %v1633_v54 = vpop.f32.mrb[65].mxu1  ;;  %3202 = vmatmul.mubr.msk.bf16.gmra.mrb[84].mxu0 %vm644_vm2, %v1681_v60 }
 0x7ab   :  { %v1634_v50 = vpop.f32.mrb[66].mxu1 }
 0x7ac   :  { %v1635_v40 = vadd.f32 %v4122_v4, %v1634_v50  ;;  %v1636_v61 = vpop.f32.mrb[67].mxu1  ;;  %v1670_v56 = vmax.f32 %v1632_v15, 0.0 }
 0x7ae   :  { %v1671_v23 = vmax.f32 %v1635_v40, 0.0 }
 0x7b0   :  { %v1682_v42 = vpack.c.bf16 %v1671_v23, %v1670_v56 }
 0x7b1   :  { %v1639_v25 = vpop.f32.mrb[68].mxu1 }
 0x7b2   :  { %v1640_v30 = vadd.f32 %v4122_v4, %v1639_v25  ;;  %v1641_v57 = vpop.f32.mrb[69].mxu1  ;;  %3205 = vmatprep.mubr.msk.bf16.mxu0 %vm644_vm2, %v1682_v42 }
 0x7b3   :  { %v1642_v35 = vpop.f32.mrb[70].mxu1 }
 0x7b4   :  { %v1643_v44 = vadd.f32 %v4122_v4, %v1642_v35  ;;  %v1644_v0 = vpop.f32.mrb[71].mxu1  ;;  %v1672_v59 = vmax.f32 %v1640_v30, 0.0 }
 0x7b6   :  { %v1673_v36 = vmax.f32 %v1643_v44, 0.0 }
 0x7b8   :  { %v1683_v2 = vpack.c.bf16 %v1673_v36, %v1672_v59 }
 0x7b9   :  { %v1647_v26 = vpop.f32.mrb[72].mxu1 }
 0x7ba   :  { %v1648_v31 = vadd.f32 %v4122_v4, %v1647_v26  ;;  %v1649_v5 = vpop.f32.mrb[73].mxu1  ;;  %3206 = vmatmul.mubr.msk.bf16.gmra.mrb[88].mxu0 %vm644_vm2, %v1683_v2 }
 0x7bb   :  { %v1650_v43 = vpop.f32.mrb[74].mxu1 }
 0x7bc   :  { %v1651_v52 = vadd.f32 %v4122_v4, %v1650_v43  ;;  %v1652_v3 = vpop.f32.mrb[75].mxu1  ;;  %v1674_v39 = vmax.f32 %v1648_v31, 0.0 }
 0x7be   :  { %v1675_v38 = vmax.f32 %v1651_v52, 0.0 }
 0x7c0   :  { %v1684_v1 = vpack.c.bf16 %v1675_v38, %v1674_v39 }
 0x7c1   :  { %v1655_v45 = vpop.f32.mrb[76].mxu1 }
 0x7c2   :  { %v1656_v6 = vadd.f32 %v4122_v4, %v1655_v45  ;;  %v1657_v46 = vpop.f32.mrb[77].mxu1  ;;  %3209 = vmatprep.mubr.msk.bf16.mxu0 %vm644_vm2, %v1684_v1  ;;  %v4215_v45 = vld [vmem:[#allocation2] sm:$0xff] }
 0x7c3   :  { %v1658_v8 = vpop.f32.mrb[78].mxu1 }
 0x7c4   :  { %v1659_v17 = vadd.f32 %v4122_v4, %v1658_v8  ;;  %v1660_v27 = vpop.f32.mrb[79].mxu1  ;;  %v1676_v32 = vmax.f32 %v1656_v6, 0.0  ;;  %v3304_v4 = vld [vmem:[%s4403_s12 + $0x10] sm:$0xff]  }
 0x7c5   :  { %2055 = vmatpush1.bf16.msra.mxu1 %v3304_v4 }
 0x7c6   :  { %v1677_v11 = vmax.f32 %v1659_v17, 0.0  ;;  %2056 = vmatprep.subr.bf16.mxu1 %v3343_v7 }
 0x7c8   :  { %v1685_v53 = vpack.c.bf16 %v1677_v11, %v1676_v32 }
 0x7c9   :  { %2057 = vmatpush1.bf16.msra.mxu1 %v3305_v58 }
 0x7ca   :  { %3210 = vmatmul.mubr.msk.bf16.gmra.mrb[92].mxu0 %vm644_vm2, %v1685_v53  ;;  %2058 = vmatprep.subr.bf16.mxu1 %v3343_v7 }
 0x7cd   :  { %2059 = vmatpush1.bf16.msra.mxu1 %v3306_v21 }
 0x7ce   :  { %2060 = vmatprep.subr.bf16.mxu1 %v3343_v7 }
 0x7d1   :  { %2061 = vmatpush1.bf16.msra.mxu1 %v3307_v14 }
 0x7d2   :  { %2062 = vmatprep.subr.bf16.mxu1 %v3343_v7 }
 0x7d5   :  { %2063 = vmatpush1.bf16.msra.mxu1 %v3308_v20 }
 0x7d6   :  { %2064 = vmatprep.subr.bf16.mxu1 %v3343_v7 }
 0x7d9   :  { %2065 = vmatpush1.bf16.msra.mxu1 %v3309_v49 }
 0x7da   :  { %2066 = vmatprep.subr.bf16.mxu1 %v3343_v7 }
 0x7dd   :  { %2067 = vmatpush1.bf16.msra.mxu1 %v3310_v10 }
 0x7de   :  { %2068 = vmatprep.subr.bf16.mxu1 %v3343_v7 }
 0x7e1   :  { %2069 = vmatpush1.bf16.msra.mxu1 %v3311_v16 }
 0x7e2   :  { %2070 = vmatprep.subr.bf16.mxu1 %v3343_v7 }
 0x7e5   :  { %2071 = vmatpush1.bf16.msra.mxu1 %v3312_v18 }
 0x7e6   :  { %2072 = vmatprep.subr.bf16.mxu1 %v3343_v7 }
 0x7e9   :  { %2073 = vmatpush1.bf16.msra.mxu1 %v3313_v19 }
 0x86d   :  { %v3199_v29 = vpop.f32.mrb[80].mxu0 }
 0x86e   :  { %v1782_v33 = vpop.f32.mrb[81].mxu0  ;;  %v1791_v48 = vadd.f32 %v3199_v29, %v2831_v24  ;;  %v4230_v29 = vld [vmem:[#allocation2 + $0x48] sm:$0xff] }
 0x86f   :  { %v3200_v37 = vpop.f32.mrb[82].mxu0  ;;  %v1783_v9 = vadd.f32 %v2831_v24, %v1782_v33 }
 0x870   :  { %v1794_v34 = vadd.f32 %v3200_v37, %v2831_v24  ;;  %v1785_v22 = vpop.f32.mrb[83].mxu0 }
 0x871   :  { %v1786_v62 = vadd.f32 %v2831_v24, %v1785_v22  ;;  %v3316_v22 = vld [vmem:[%s4405_s14 + $0x10] sm:$0xff]  }
 0x872   :  { %v1849_v13 = vpack.c.bf16 %v1794_v34, %v1791_v48  ;;  %v3314_v48 = vld [vmem:[%s4405_s14] sm:$0xff]   ;;  %v3315_v34 = vld [vmem:[%s4405_s14 + $0x8] sm:$0xff]  }
 0x873   :  { %v1848_v41 = vpack.c.bf16 %v1786_v62, %v1783_v9  ;;  %2367 = vmatpush1.bf16.msra.mxu0 %v3314_v48  ;;  %v3317_v9 = vld [vmem:[%s4405_s14 + $0x18] sm:$0xff]   ;;  %v3318_v62 = vld [vmem:[%s4405_s14 + $0x20] sm:$0xff]  }
 0x874   :  { %1857 = vst.msk [vmem:[#allocation2 + $0x10] sm:$0xff] %vm644_vm2, %v1849_v13  ;;  %1884 = vrot.lane.b32.xlu1 %v1849_v13, %s3342_s25  ;;  %2368 = vmatprep.subr.bf16.mxu0 %v3343_v7  ;;  %v3319_v13 = vld [vmem:[%s4405_s14 + $0x28] sm:$0xff]  }
 0x875   :  { %1856 = vst.msk [vmem:[#allocation2 + $0x8] sm:$0xff] %vm644_vm2, %v1848_v41  ;;  %1882 = vrot.lane.b32.xlu0 %v1848_v41, %s3342_s25  ;;  %v3320_v41 = vld [vmem:[%s4405_s14 + $0x30] sm:$0xff]  }
 0x877   :  { %2369 = vmatpush1.bf16.msra.mxu0 %v3315_v34 }
 0x878   :  { %2370 = vmatprep.subr.bf16.mxu0 %v3343_v7 }
 0x87b   :  { %v1866_v51 = vld [vmem:[#allocation2 + $0x10] sm:$0xff]  ;;  %2371 = vmatpush1.bf16.msra.mxu0 %v3316_v22 }
 0x87c   :  { %2857 = vmatprep.mubr.msk.bf16.mxu1 %vm644_vm2, %v1866_v51  ;;  %v1865_v27 = vld [vmem:[#allocation2 + $0x8] sm:$0xff]  ;;  %2372 = vmatprep.subr.bf16.mxu0 %v3343_v7 }
 0x87d   :  { %v3203_v47 = vpop.f32.mrb[84].mxu0 }
 0x87e   :  { %v1798_v63 = vpop.f32.mrb[85].mxu0  ;;  %v1807_v28 = vadd.f32 %v3203_v47, %v2831_v24  ;;  %v3322_v47 = vld [vmem:[%s4405_s14 + $0x40] sm:$0xff]  }
 0x87f   :  { %v3204_v60 = vpop.f32.mrb[86].mxu0  ;;  %v1799_v50 = vadd.f32 %v2831_v24, %v1798_v63  ;;  %2373 = vmatpush1.bf16.msra.mxu0 %v3317_v9  ;;  %v3323_v63 = vld [vmem:[%s4405_s14 + $0x48] sm:$0xff]  }
 0x880   :  { %v1810_v15 = vadd.f32 %v3204_v60, %v2831_v24  ;;  %v1801_v54 = vpop.f32.mrb[87].mxu0  ;;  %2374 = vmatprep.subr.bf16.mxu0 %v3343_v7  ;;  %v3324_v60 = vld [vmem:[%s4405_s14 + $0x50] sm:$0xff]  }
 0x881   :  { %v1802_v40 = vadd.f32 %v2831_v24, %v1801_v54 }
 0x882   :  { %v1851_v61 = vpack.c.bf16 %v1810_v15, %v1807_v28  ;;  %v3325_v28 = vld [vmem:[%s4405_s14 + $0x58] sm:$0xff]   ;;  %v4286_v15 = vld [vmem:[%s4406_s13] ss:$0 sm:$0xff] }
 0x883   :  { %v1850_v56 = vpack.c.bf16 %v1802_v40, %v1799_v50  ;;  %2375 = vmatpush1.bf16.msra.mxu0 %v3318_v62 }
 0x884   :  { %1859 = vst.msk [vmem:[#allocation2 + $0x20] sm:$0xff] %vm644_vm2, %v1851_v61  ;;  %1888 = vrot.lane.b32.xlu1 %v1851_v61, %s3342_s25  ;;  %2376 = vmatprep.subr.bf16.mxu0 %v3343_v7 }
 0x885   :  { %1858 = vst.msk [vmem:[#allocation2 + $0x18] sm:$0xff] %vm644_vm2, %v1850_v56  ;;  %1886 = vrot.lane.b32.xlu0 %v1850_v56, %s3342_s25 }
 0x887   :  { %2377 = vmatpush1.bf16.msra.mxu0 %v3319_v13 }
 0x888   :  { %2378 = vmatprep.subr.bf16.mxu0 %v3343_v7 }
 0x88b   :  { %v1868_v11 = vld [vmem:[#allocation2 + $0x20] sm:$0xff]  ;;  %2379 = vmatpush1.bf16.msra.mxu0 %v3320_v41 }
 0x88c   :  { %v1867_v8 = vld [vmem:[#allocation2 + $0x18] sm:$0xff]  ;;  %2380 = vmatprep.subr.bf16.mxu0 %v3343_v7 }
 0x88d   :  { %v3207_v23 = vpop.f32.mrb[88].mxu0 }
 0x88e   :  { %v1814_v42 = vpop.f32.mrb[89].mxu0  ;;  %v1823_v30 = vadd.f32 %v3207_v23, %v2831_v24 }
 0x88f   :  { %v3208_v25 = vpop.f32.mrb[90].mxu0  ;;  %v1815_v44 = vadd.f32 %v2831_v24, %v1814_v42 }
 0x890   :  { %v1826_v57 = vadd.f32 %v3208_v25, %v2831_v24  ;;  %v1817_v35 = vpop.f32.mrb[91].mxu0 }
 0x891   :  { %v1818_v0 = vadd.f32 %v2831_v24, %v1817_v35 }
 0x892   :  { %v1853_v59 = vpack.c.bf16 %v1826_v57, %v1823_v30 }
 0x893   :  { %v1852_v36 = vpack.c.bf16 %v1818_v0, %v1815_v44 }
 0x894   :  { %1861 = vst.msk [vmem:[#allocation2 + $0x30] sm:$0xff] %vm644_vm2, %v1853_v59  ;;  %1892 = vrot.lane.b32.xlu1 %v1853_v59, %s3342_s25 }
 0x895   :  { %1860 = vst.msk [vmem:[#allocation2 + $0x28] sm:$0xff] %vm644_vm2, %v1852_v36  ;;  %1890 = vrot.lane.b32.xlu0 %v1852_v36, %s3342_s25 }
 0x89b   :  { %v1870_v21 = vld [vmem:[#allocation2 + $0x30] sm:$0xff] }
 0x89c   :  { %v1869_v55 = vld [vmem:[#allocation2 + $0x28] sm:$0xff] }
 0x89d   :  { %v3211_v2 = vpop.f32.mrb[92].mxu0 }
 0x89e   :  { %v1830_v26 = vpop.f32.mrb[93].mxu0  ;;  %v1839_v5 = vadd.f32 %v3211_v2, %v2831_v24 }
 0x89f   :  { %v3212_v31 = vpop.f32.mrb[94].mxu0  ;;  %v1831_v3 = vadd.f32 %v2831_v24, %v1830_v26 }
 0x8a0   :  { %v1842_v43 = vadd.f32 %v3212_v31, %v2831_v24  ;;  %v1833_v52 = vpop.f32.mrb[95].mxu0 }
 0x8a1   :  { %v1834_v39 = vadd.f32 %v2831_v24, %v1833_v52 }
 0x8a2   :  { %v1855_v38 = vpack.c.bf16 %v1842_v43, %v1839_v5 }
 0x8a3   :  { %v1854_v1 = vpack.c.bf16 %v1834_v39, %v1831_v3 }
 0x8a4   :  { %1863 = vst.msk [vmem:[#allocation2 + $0x40] sm:$0xff] %vm644_vm2, %v1855_v38  ;;  %1896 = vrot.lane.b32.xlu1 %v1855_v38, %s3342_s25 }
 0x8a5   :  { %1862 = vst.msk [vmem:[#allocation2 + $0x38] sm:$0xff] %vm644_vm2, %v1854_v1  ;;  %1894 = vrot.lane.b32.xlu0 %v1854_v1, %s3342_s25 }
 0x8ab   :  { %v1872_v18 = vld [vmem:[#allocation2 + $0x40] sm:$0xff] }
 0x8ac   :  { %v1871_v49 = vld [vmem:[#allocation2 + $0x38] sm:$0xff] }
 0x8e6   :  { %v1885_v17 = vpop.permute.xlu1 %1884 }
 0x8e7   :  { %v1883_v6 = vpop.permute.xlu0 %1882  ;;  %v1904_v32 = vsel %vm644_vm2, %v1865_v27, %v1885_v17 }
 0x8e8   :  { %v1900_v46 = vsel %vm644_vm2, %v4215_v45, %v1883_v6 }
 0x8e9   :  { %2083 = vmatmul.mubr.bf16.vlgmr.msra.gmra.mrb[80].mxu1 %v1900_v46 }
 0x8ea   :  { %2858 = vmatprep.mubr.msk.bf16.mxu1 %vm644_vm2, %v1867_v8 }
 0x8f1   :  { %2091 = vmatmul.mubr.bf16.gmra.mrb[84].mxu1 %v1904_v32 }
 0x8f2   :  { %2859 = vmatprep.mubr.msk.bf16.mxu1 %vm644_vm2, %v1868_v11 }
 0x8f6   :  { %v1889_v4 = vpop.permute.xlu1 %1888 }
 0x8f7   :  { %v1887_v53 = vpop.permute.xlu0 %1886  ;;  %v1912_v58 = vsel %vm644_vm2, %v1867_v8, %v1889_v4 }
 0x8f8   :  { %v1908_v12 = vsel %vm644_vm2, %v1866_v51, %v1887_v53  ;;  %v3321_v51 = vld [vmem:[%s4405_s14 + $0x38] sm:$0xff]  }
 0x8f9   :  { %2099 = vmatmul.mubr.bf16.gmra.mrb[88].mxu1 %v1908_v12  ;;  %2381 = vmatpush1.bf16.msra.mxu0 %v3321_v51 }
 0x8fa   :  { %2860 = vmatprep.mubr.msk.bf16.mxu1 %vm644_vm2, %v1869_v55  ;;  %2382 = vmatprep.subr.bf16.mxu0 %v3343_v7 }
 0x8fd   :  { %2383 = vmatpush1.bf16.msra.mxu0 %v3322_v47 }
 0x8fe   :  { %2384 = vmatprep.subr.bf16.mxu0 %v3343_v7 }
 0x901   :  { %2107 = vmatmul.mubr.bf16.gmra.mrb[92].mxu1 %v1912_v58  ;;  %2385 = vmatpush1.bf16.msra.mxu0 %v3323_v63 }
 0x902   :  { %2861 = vmatprep.mubr.msk.bf16.mxu1 %vm644_vm2, %v1870_v21  ;;  %2386 = vmatprep.subr.bf16.mxu0 %v3343_v7 }
 0x905   :  { %2387 = vmatpush1.bf16.msra.mxu0 %v3324_v60 }
 0x906   :  { %v1893_v10 = vpop.permute.xlu1 %1892  ;;  %2388 = vmatprep.subr.bf16.mxu0 %v3343_v7 }
 0x907   :  { %v1891_v14 = vpop.permute.xlu0 %1890  ;;  %v1920_v16 = vsel %vm644_vm2, %v1869_v55, %v1893_v10 }
 0x908   :  { %v1916_v20 = vsel %vm644_vm2, %v1868_v11, %v1891_v14 }
 0x909   :  { %2115 = vmatmul.mubr.bf16.gmra.mrb[96].mxu1 %v1916_v20  ;;  %2389 = vmatpush1.bf16.msra.mxu0 %v3325_v28 }
 0x90a   :  { %2862 = vmatprep.mubr.msk.bf16.mxu1 %vm644_vm2, %v1871_v49 }
 0x911   :  { %2123 = vmatmul.mubr.bf16.gmra.mrb[100].mxu1 %v1920_v16 }
 0x912   :  { %2863 = vmatprep.mubr.msk.bf16.mxu1 %vm644_vm2, %v1872_v18 }
 0x916   :  { %v1897_v33 = vpop.permute.xlu1 %1896 }
 0x917   :  { %v1895_v19 = vpop.permute.xlu0 %1894  ;;  %v1928_v37 = vsel %vm644_vm2, %v1871_v49, %v1897_v33 }
 0x918   :  { %v1924_v24 = vsel %vm644_vm2, %v1870_v21, %v1895_v19 }
 0x919   :  { %2131 = vmatmul.mubr.bf16.gmra.mrb[104].mxu1 %v1924_v24 }
 0x91a   :  { %2864 = vmatprep.mubr.msk.bf16.mxu1 %vm644_vm2, %v4230_v29 }
 0x921   :  { %2139 = vmatmul.mubr.bf16.gmra.mrb[108].mxu1 %v1928_v37 }
 0x9bc   :  { %v2084_v54 = vpop.f32.mrb[80].mxu1 }
 0x9bd   :  { %v2085_v50 = vadd.f32 %v4286_v15, %v2084_v54  ;;  %v2086_v40 = vpop.f32.mrb[81].mxu1 }
 0x9be   :  { %v2087_v61 = vpop.f32.mrb[82].mxu1  ;;  %v3326_v40 = vld [vmem:[%s4407_s16] sm:$0xff]  }
 0x9bf   :  { %v2088_v56 = vadd.f32 %v4286_v15, %v2087_v61  ;;  %v2089_v23 = vpop.f32.mrb[83].mxu1  ;;  %v2147_v42 = vmax.f32 %v2085_v50, 0.0  ;;  %3213 = vmatprep.subr.bf16.mxu1 %v3326_v40 }
 0x9c0   :  { %3214 = vmatpush3.bf16.msra.mxu1 %v3326_v40 }
 0x9c1   :  { %v2148_v25 = vmax.f32 %v2088_v56, 0.0  ;;  %v3327_v56 = vld [vmem:[%s4407_s16 + $0x8] sm:$0xff]  }
 0x9c2   :  { %3215 = vmatprep.subr.bf16.mxu1 %v3327_v56 }
 0x9c3   :  { %v2164_v30 = vpack.c.bf16 %v2148_v25, %v2147_v42 }
 0x9c4   :  { %v2092_v57 = vpop.f32.mrb[84].mxu1  ;;  %3216 = vmatpush3.bf16.msra.mxu1 %v3327_v56 }
 0x9c5   :  { %2172 = vst.msk [vmem:[#allocation2 + $0x8] sm:$0xff] %vm644_vm2, %v2164_v30  ;;  %v2093_v7 = vadd.f32 %v4286_v15, %v2092_v57  ;;  %v2094_v35 = vpop.f32.mrb[85].mxu1  ;;  %2198 = vrot.lane.b32.xlu0 %v2164_v30, %s3342_s25 }
 0x9c6   :  { %v2095_v44 = vpop.f32.mrb[86].mxu1 }
 0x9c7   :  { %v2096_v0 = vadd.f32 %v4286_v15, %v2095_v44  ;;  %v2097_v59 = vpop.f32.mrb[87].mxu1  ;;  %v2149_v36 = vmax.f32 %v2093_v7, 0.0 }
 0x9c9   :  { %v2150_v2 = vmax.f32 %v2096_v0, 0.0 }
 0x9cb   :  { %v2165_v26 = vpack.c.bf16 %v2150_v2, %v2149_v36 }
 0x9cc   :  { %v2100_v31 = vpop.f32.mrb[88].mxu1 }
 0x9cd   :  { %2173 = vst.msk [vmem:[#allocation2 + $0x10] sm:$0xff] %vm644_vm2, %v2165_v26  ;;  %v2101_v5 = vadd.f32 %v4286_v15, %v2100_v31  ;;  %v2102_v43 = vpop.f32.mrb[89].mxu1  ;;  %2200 = vrot.lane.b32.xlu1 %v2165_v26, %s3342_s25  ;;  %v2181_v31 = vld [vmem:[#allocation2 + $0x8] sm:$0xff] }
 0x9ce   :  { %v2103_v52 = vpop.f32.mrb[90].mxu1 }
 0x9cf   :  { %v2104_v3 = vadd.f32 %v4286_v15, %v2103_v52  ;;  %v2105_v39 = vpop.f32.mrb[91].mxu1  ;;  %v2151_v38 = vmax.f32 %v2101_v5, 0.0 }
 0x9d1   :  { %v2152_v1 = vmax.f32 %v2104_v3, 0.0 }
 0x9d3   :  { %v2166_v6 = vpack.c.bf16 %v2152_v1, %v2151_v38 }
 0x9d4   :  { %v2108_v46 = vpop.f32.mrb[92].mxu1  ;;  %v4298_v8 = vld [vmem:[#allocation2 + $0x10] sm:$0xff] }
 0x9d5   :  { %2174 = vst.msk [vmem:[#allocation2 + $0x18] sm:$0xff] %vm644_vm2, %v2166_v6  ;;  %v2109_v17 = vadd.f32 %v4286_v15, %v2108_v46  ;;  %v2110_v27 = vpop.f32.mrb[93].mxu1  ;;  %2878 = vmatprep.mubr.msk.bf16.mxu0 %vm644_vm2, %v4298_v8  ;;  %2202 = vrot.lane.b32.xlu0 %v2166_v6, %s3342_s25 }
 0x9d6   :  { %v2111_v32 = vpop.f32.mrb[94].mxu1 }
 0x9d7   :  { %v2112_v11 = vadd.f32 %v4286_v15, %v2111_v32  ;;  %v2113_v53 = vpop.f32.mrb[95].mxu1  ;;  %v2153_v12 = vmax.f32 %v2109_v17, 0.0 }
 0x9d9   :  { %v2154_v55 = vmax.f32 %v2112_v11, 0.0 }
 0x9db   :  { %v2167_v4 = vpack.c.bf16 %v2154_v55, %v2153_v12  ;;  %v3328_v55 = vld [vmem:[%s4407_s16 + $0x10] sm:$0xff]  }
 0x9dc   :  { %v2116_v58 = vpop.f32.mrb[96].mxu1  ;;  %v2183_v2 = vld [vmem:[#allocation2 + $0x18] sm:$0xff]  ;;  %3217 = vmatprep.subr.bf16.mxu1 %v3328_v55 }
 0x9dd   :  { %2175 = vst.msk [vmem:[#allocation2 + $0x20] sm:$0xff] %vm644_vm2, %v2167_v4  ;;  %v2117_v21 = vadd.f32 %v4286_v15, %v2116_v58  ;;  %v2118_v14 = vpop.f32.mrb[97].mxu1  ;;  %2204 = vrot.lane.b32.xlu1 %v2167_v4, %s3342_s25  ;;  %3218 = vmatpush3.bf16.msra.mxu1 %v3328_v55  ;;  %v3329_v4 = vld [vmem:[%s4407_s16 + $0x18] sm:$0xff]   ;;  %v2886_v55 = vld [vmem:[%s4410_s17] ss:$0 sm:$0xff] }
 0x9de   :  { %v2119_v20 = vpop.f32.mrb[98].mxu1  ;;  %3219 = vmatprep.subr.bf16.mxu1 %v3329_v4 }
 0x9df   :  { %v2120_v49 = vadd.f32 %v4286_v15, %v2119_v20  ;;  %v2121_v10 = vpop.f32.mrb[99].mxu1  ;;  %v2155_v16 = vmax.f32 %v2117_v21, 0.0 }
 0x9e1   :  { %v2156_v18 = vmax.f32 %v2120_v49, 0.0  ;;  %3220 = vmatpush3.bf16.msra.mxu1 %v3329_v4 }
 0x9e3   :  { %v2168_v19 = vpack.c.bf16 %v2156_v18, %v2155_v16 }
 0x9e4   :  { %v2124_v24 = vpop.f32.mrb[100].mxu1  ;;  %v2184_v5 = vld [vmem:[#allocation2 + $0x20] sm:$0xff] }
 0x9e5   :  { %2176 = vst.msk [vmem:[#allocation2 + $0x28] sm:$0xff] %vm644_vm2, %v2168_v19  ;;  %v2125_v33 = vadd.f32 %v4286_v15, %v2124_v24  ;;  %2206 = vrot.lane.b32.xlu0 %v2168_v19, %s3342_s25  ;;  %v2126_v37 = vpop.f32.mrb[101].mxu1 }
 0x9e6   :  { %v2127_v48 = vpop.f32.mrb[102].mxu1 }
 0x9e7   :  { %v2128_v34 = vadd.f32 %v4286_v15, %v2127_v48  ;;  %v2129_v22 = vpop.f32.mrb[103].mxu1  ;;  %v2157_v9 = vmax.f32 %v2125_v33, 0.0 }
 0x9e9   :  { %v2158_v62 = vmax.f32 %v2128_v34, 0.0 }
 0x9eb   :  { %v2169_v13 = vpack.c.bf16 %v2158_v62, %v2157_v9 }
 0x9ec   :  { %v2132_v41 = vpop.f32.mrb[104].mxu1  ;;  %v2185_v3 = vld [vmem:[#allocation2 + $0x28] sm:$0xff] }
 0x9ed   :  { %2177 = vst.msk [vmem:[#allocation2 + $0x30] sm:$0xff] %vm644_vm2, %v2169_v13  ;;  %v2133_v51 = vadd.f32 %v4286_v15, %v2132_v41  ;;  %v2134_v47 = vpop.f32.mrb[105].mxu1  ;;  %2208 = vrot.lane.b32.xlu1 %v2169_v13, %s3342_s25 }
 0x9ee   :  { %v2135_v63 = vpop.f32.mrb[106].mxu1 }
 0x9ef   :  { %v2136_v60 = vadd.f32 %v4286_v15, %v2135_v63  ;;  %v2137_v28 = vpop.f32.mrb[107].mxu1  ;;  %v2159_v54 = vmax.f32 %v2133_v51, 0.0 }
 0x9f1   :  { %v2160_v50 = vmax.f32 %v2136_v60, 0.0 }
 0x9f3   :  { %v2170_v61 = vpack.c.bf16 %v2160_v50, %v2159_v54 }
 0x9f4   :  { %v2140_v23 = vpop.f32.mrb[108].mxu1  ;;  %v2186_v38 = vld [vmem:[#allocation2 + $0x30] sm:$0xff] }
 0x9f5   :  { %2178 = vst.msk [vmem:[#allocation2 + $0x38] sm:$0xff] %vm644_vm2, %v2170_v61  ;;  %v2141_v42 = vadd.f32 %v4286_v15, %v2140_v23  ;;  %2210 = vrot.lane.b32.xlu0 %v2170_v61, %s3342_s25  ;;  %v2142_v25 = vpop.f32.mrb[109].mxu1 }
 0x9f6   :  { %v2143_v30 = vpop.f32.mrb[110].mxu1 }
 0x9f7   :  { %v2144_v57 = vadd.f32 %v4286_v15, %v2143_v30  ;;  %v2145_v7 = vpop.f32.mrb[111].mxu1  ;;  %v2161_v35 = vmax.f32 %v2141_v42, 0.0 }
 0x9f9   :  { %v2162_v44 = vmax.f32 %v2144_v57, 0.0 }
 0x9fb   :  { %v2171_v0 = vpack.c.bf16 %v2162_v44, %v2161_v35 }
 0x9fc   :  { %v2187_v46 = vld [vmem:[#allocation2 + $0x38] sm:$0xff] }
 0x9fd   :  { %2179 = vst.msk [vmem:[#allocation2 + $0x40] sm:$0xff] %vm644_vm2, %v2171_v0  ;;  %2212 = vrot.lane.b32.xlu1 %v2171_v0, %s3342_s25 }
 0xa04   :  { %v2188_v27 = vld [vmem:[#allocation2 + $0x40] sm:$0xff] }
 0xa37   :  { %v2199_v59 = vpop.permute.xlu0 %2198 }
 0xa38   :  { %v2216_v36 = vsel %vm644_vm2, %v4215_v45, %v2199_v59 }
 0xa39   :  { %2399 = vmatmul.mubr.bf16.vlgmr.msra.gmra.mrb[96].mxu0 %v2216_v36 }
 0xa3a   :  { %2879 = vmatprep.mubr.msk.bf16.mxu0 %vm644_vm2, %v2183_v2 }
 0xa3f   :  { %v2201_v26 = vpop.permute.xlu1 %2200 }
 0xa40   :  { %v2220_v15 = vsel %vm644_vm2, %v2181_v31, %v2201_v26 }
 0xa41   :  { %2407 = vmatmul.mubr.bf16.gmra.mrb[100].mxu0 %v2220_v15 }
 0xa42   :  { %2880 = vmatprep.mubr.msk.bf16.mxu0 %vm644_vm2, %v2184_v5 }
 0xa47   :  { %v2203_v43 = vpop.permute.xlu0 %2202 }
 0xa48   :  { %v2224_v52 = vsel %vm644_vm2, %v4298_v8, %v2203_v43 }
 0xa49   :  { %2415 = vmatmul.mubr.bf16.gmra.mrb[104].mxu0 %v2224_v52 }
 0xa4a   :  { %2881 = vmatprep.mubr.msk.bf16.mxu0 %vm644_vm2, %v2185_v3 }
 0xa4f   :  { %v2205_v45 = vpop.permute.xlu1 %2204 }
 0xa50   :  { %v2228_v39 = vsel %vm644_vm2, %v2183_v2, %v2205_v45 }
 0xa51   :  { %2423 = vmatmul.mubr.bf16.gmra.mrb[108].mxu0 %v2228_v39 }
 0xa52   :  { %2882 = vmatprep.mubr.msk.bf16.mxu0 %vm644_vm2, %v2186_v38 }
 0xa57   :  { %v2207_v1 = vpop.permute.xlu0 %2206 }
 0xa58   :  { %v2232_v6 = vsel %vm644_vm2, %v2184_v5, %v2207_v1 }
 0xa59   :  { %2431 = vmatmul.mubr.bf16.gmra.mrb[112].mxu0 %v2232_v6 }
 0xa5a   :  { %2883 = vmatprep.mubr.msk.bf16.mxu0 %vm644_vm2, %v2187_v46 }
 0xa5f   :  { %v2209_v17 = vpop.permute.xlu1 %2208 }
 0xa60   :  { %v2236_v8 = vsel %vm644_vm2, %v2185_v3, %v2209_v17 }
 0xa61   :  { %2439 = vmatmul.mubr.bf16.gmra.mrb[116].mxu0 %v2236_v8 }
 0xa62   :  { %2884 = vmatprep.mubr.msk.bf16.mxu0 %vm644_vm2, %v2188_v27  ;;  %v3344_v27 = vmov 0.0  }
 0xa63   :  { %3237 = vmatprep.subr.bf16.mxu0 %v3344_v27 }
 0xa67   :  { %v2211_v32 = vpop.permute.xlu0 %2210 }
 0xa68   :  { %v2240_v11 = vsel %vm644_vm2, %v2186_v38, %v2211_v32  ;;  %v3330_v32 = vld [vmem:[%s4409_s18] sm:$0xff]  }
 0xa69   :  { %2447 = vmatmul.mubr.bf16.gmra.mrb[120].mxu0 %v2240_v11  ;;  %v3331_v11 = vld [vmem:[%s4409_s18 + $0x8] sm:$0xff]  }
 0xa6a   :  { %2885 = vmatprep.mubr.msk.bf16.mxu0 %vm644_vm2, %v4230_v29  ;;  %v2865_v29 = vld [vmem:[%s4408_s15] ss:$0 sm:$0xff]  ;;  %3238 = vmatpush3.bf16.msra.mxu0 %v3330_v32 }
 0xa6b   :  { %3239 = vmatprep.subr.bf16.mxu0 %v3344_v27 }
 0xa6e   :  { %3240 = vmatpush3.bf16.msra.mxu0 %v3331_v11 }
 0xa6f   :  { %v2213_v53 = vpop.permute.xlu1 %2212  ;;  %3241 = vmatprep.subr.bf16.mxu0 %v3344_v27 }
 0xa70   :  { %v2244_v12 = vsel %vm644_vm2, %v2187_v46, %v2213_v53  ;;  %v3332_v53 = vld [vmem:[%s4409_s18 + $0x10] sm:$0xff]  }
 0xa71   :  { %2455 = vmatmul.mubr.bf16.gmra.mrb[124].mxu0 %v2244_v12  ;;  %v3333_v12 = vld [vmem:[%s4409_s18 + $0x18] sm:$0xff]  }
 0xa72   :  { %3242 = vmatpush3.bf16.msra.mxu0 %v3332_v53  ;;  %3245 = vmatprep.mubr.msk.bf16.mxu0 %vm3345_vm3, %v3344_v27 }
 0xa73   :  { %3243 = vmatprep.subr.bf16.mxu0 %v3344_v27 }
 0xa76   :  { %3244 = vmatpush3.bf16.msra.mxu0 %v3333_v12 }
 0xb0c   :  { %v2400_v58 = vpop.f32.mrb[96].mxu0 }
 0xb0d   :  { %v2402_v21 = vpop.f32.mrb[97].mxu0  ;;  %v2401_v20 = vadd.f32 %v2865_v29, %v2400_v58 }
 0xb0e   :  { %v2403_v14 = vpop.f32.mrb[98].mxu0 }
 0xb0f   :  { %v2404_v49 = vadd.f32 %v2865_v29, %v2403_v14  ;;  %v2405_v10 = vpop.f32.mrb[99].mxu0 }
 0xb11   :  { %v2463_v16 = vpack.c.bf16 %v2404_v49, %v2401_v20 }
 0xb13   :  { %3221 = vmatprep.mubr.msk.bf16.mxu1 %vm644_vm2, %v2463_v16 }
 0xb14   :  { %v2408_v18 = vpop.f32.mrb[100].mxu0 }
 0xb15   :  { %v2410_v19 = vpop.f32.mrb[101].mxu0  ;;  %v2409_v33 = vadd.f32 %v2865_v29, %v2408_v18 }
 0xb16   :  { %v2411_v24 = vpop.f32.mrb[102].mxu0 }
 0xb17   :  { %v2412_v37 = vadd.f32 %v2865_v29, %v2411_v24  ;;  %v2413_v48 = vpop.f32.mrb[103].mxu0 }
 0xb19   :  { %v2464_v34 = vpack.c.bf16 %v2412_v37, %v2409_v33 }
 0xb1b   :  { %3222 = vmatmul.mubr.msk.bf16.vlgmr.msra.gmra.mrb[112].mxu1 %vm644_vm2, %v2464_v34 }
 0xb1c   :  { %v2416_v22 = vpop.f32.mrb[104].mxu0 }
 0xb1d   :  { %v2418_v9 = vpop.f32.mrb[105].mxu0  ;;  %v2417_v13 = vadd.f32 %v2865_v29, %v2416_v22 }
 0xb1e   :  { %v2419_v62 = vpop.f32.mrb[106].mxu0 }
 0xb1f   :  { %v2420_v41 = vadd.f32 %v2865_v29, %v2419_v62  ;;  %v2421_v51 = vpop.f32.mrb[107].mxu0 }
 0xb21   :  { %v2465_v47 = vpack.c.bf16 %v2420_v41, %v2417_v13 }
 0xb23   :  { %3225 = vmatprep.mubr.msk.bf16.mxu1 %vm644_vm2, %v2465_v47 }
 0xb24   :  { %v2424_v63 = vpop.f32.mrb[108].mxu0 }
 0xb25   :  { %v2426_v60 = vpop.f32.mrb[109].mxu0  ;;  %v2425_v54 = vadd.f32 %v2865_v29, %v2424_v63 }
 0xb26   :  { %v2427_v28 = vpop.f32.mrb[110].mxu0 }
 0xb27   :  { %v2428_v50 = vadd.f32 %v2865_v29, %v2427_v28  ;;  %v2429_v40 = vpop.f32.mrb[111].mxu0 }
 0xb29   :  { %v2466_v61 = vpack.c.bf16 %v2428_v50, %v2425_v54 }
 0xb2b   :  { %3226 = vmatmul.mubr.msk.bf16.gmra.mrb[116].mxu1 %vm644_vm2, %v2466_v61 }
 0xb2c   :  { %v2432_v56 = vpop.f32.mrb[112].mxu0 }
 0xb2d   :  { %v2434_v23 = vpop.f32.mrb[113].mxu0  ;;  %v2433_v25 = vadd.f32 %v2865_v29, %v2432_v56 }
 0xb2e   :  { %v2435_v42 = vpop.f32.mrb[114].mxu0 }
 0xb2f   :  { %v2436_v30 = vadd.f32 %v2865_v29, %v2435_v42  ;;  %v2437_v57 = vpop.f32.mrb[115].mxu0 }
 0xb31   :  { %v2467_v7 = vpack.c.bf16 %v2436_v30, %v2433_v25 }
 0xb33   :  { %3229 = vmatprep.mubr.msk.bf16.mxu1 %vm644_vm2, %v2467_v7 }
 0xb34   :  { %v2440_v35 = vpop.f32.mrb[116].mxu0 }
 0xb35   :  { %v2442_v44 = vpop.f32.mrb[117].mxu0  ;;  %v2441_v59 = vadd.f32 %v2865_v29, %v2440_v35 }
 0xb36   :  { %v2443_v0 = vpop.f32.mrb[118].mxu0 }
 0xb37   :  { %v2444_v36 = vadd.f32 %v2865_v29, %v2443_v0  ;;  %v2445_v2 = vpop.f32.mrb[119].mxu0 }
 0xb39   :  { %v2468_v26 = vpack.c.bf16 %v2444_v36, %v2441_v59 }
 0xb3b   :  { %3230 = vmatmul.mubr.msk.bf16.gmra.mrb[120].mxu1 %vm644_vm2, %v2468_v26 }
 0xb3c   :  { %v2448_v31 = vpop.f32.mrb[120].mxu0 }
 0xb3d   :  { %v2450_v15 = vpop.f32.mrb[121].mxu0  ;;  %v2449_v43 = vadd.f32 %v2865_v29, %v2448_v31 }
 0xb3e   :  { %v2451_v5 = vpop.f32.mrb[122].mxu0 }
 0xb3f   :  { %v2452_v52 = vadd.f32 %v2865_v29, %v2451_v5  ;;  %v2453_v3 = vpop.f32.mrb[123].mxu0 }
 0xb41   :  { %v2469_v45 = vpack.c.bf16 %v2452_v52, %v2449_v43 }
 0xb43   :  { %3233 = vmatprep.mubr.msk.bf16.mxu1 %vm644_vm2, %v2469_v45 }
 0xb44   :  { %v2456_v39 = vpop.f32.mrb[124].mxu0 }
 0xb45   :  { %v2458_v38 = vpop.f32.mrb[125].mxu0  ;;  %v2457_v6 = vadd.f32 %v2865_v29, %v2456_v39 }
 0xb46   :  { %v2459_v1 = vpop.f32.mrb[126].mxu0 }
 0xb47   :  { %v2460_v46 = vadd.f32 %v2865_v29, %v2459_v1  ;;  %v2461_v17 = vpop.f32.mrb[127].mxu0 }
 0xb49   :  { %v2470_v8 = vpack.c.bf16 %v2460_v46, %v2457_v6 }
 0xb4b   :  { %3234 = vmatmul.mubr.msk.bf16.gmra.mrb[124].mxu1 %vm644_vm2, %v2470_v8 }
 0xbee   :  { %v3223_v4 = vpop.f32.mrb[112].mxu1 }
 0xbef   :  { %v2577_v29 = vadd.f32 %v3223_v4, %v2886_v55  ;;  %v2568_v58 = vpop.f32.mrb[113].mxu1  ;;  %v2899_v4 = vld [vmem:[%s4411_s19] ss:$0 sm:$0xff] }
 0xbf0   :  { %v2569_v21 = vadd.f32 %v2886_v55, %v2568_v58  ;;  %v3224_v14 = vpop.f32.mrb[114].mxu1 }
 0xbf1   :  { %v2633_v20 = vmax.f32 %v2577_v29, 0.0  ;;  %v2580_v49 = vadd.f32 %v3224_v14, %v2886_v55  ;;  %v2571_v10 = vpop.f32.mrb[115].mxu1 }
 0xbf2   :  { %v2631_v16 = vmax.f32 %v2569_v21, 0.0  ;;  %v2572_v18 = vadd.f32 %v2886_v55, %v2571_v10 }
 0xbf3   :  { %v2634_v19 = vmax.f32 %v2580_v49, 0.0 }
 0xbf4   :  { %v2647_v24 = vadd.f32 %v2633_v20, %v2631_v16  ;;  %v2632_v33 = vmax.f32 %v2572_v18, 0.0 }
 0xbf6   :  { %v2648_v37 = vadd.f32 %v2634_v19, %v2632_v33 }
 0xbfe   :  { %v3227_v48 = vpop.f32.mrb[116].mxu1 }
 0xbff   :  { %v2593_v34 = vadd.f32 %v3227_v48, %v2886_v55  ;;  %v2584_v22 = vpop.f32.mrb[117].mxu1 }
 0xc00   :  { %v2585_v9 = vadd.f32 %v2886_v55, %v2584_v22  ;;  %v3228_v62 = vpop.f32.mrb[118].mxu1 }
 0xc01   :  { %v2637_v13 = vmax.f32 %v2593_v34, 0.0  ;;  %v2596_v41 = vadd.f32 %v3228_v62, %v2886_v55  ;;  %v2587_v51 = vpop.f32.mrb[119].mxu1 }
 0xc02   :  { %v2635_v47 = vmax.f32 %v2585_v9, 0.0  ;;  %v2588_v63 = vadd.f32 %v2886_v55, %v2587_v51 }
 0xc03   :  { %v2638_v60 = vmax.f32 %v2596_v41, 0.0 }
 0xc04   :  { %v2649_v28 = vadd.f32 %v2637_v13, %v2635_v47  ;;  %v2636_v54 = vmax.f32 %v2588_v63, 0.0 }
 0xc06   :  { %v2655_v50 = vadd.f32 %v2649_v28, %v2647_v24  ;;  %v2650_v40 = vadd.f32 %v2638_v60, %v2636_v54 }
 0xc08   :  { %v2656_v61 = vadd.f32 %v2650_v40, %v2648_v37 }
 0xc0e   :  { %v3231_v56 = vpop.f32.mrb[120].mxu1 }
 0xc0f   :  { %v2609_v23 = vadd.f32 %v3231_v56, %v2886_v55  ;;  %v2600_v42 = vpop.f32.mrb[121].mxu1 }
 0xc10   :  { %v2601_v25 = vadd.f32 %v2886_v55, %v2600_v42  ;;  %v3232_v30 = vpop.f32.mrb[122].mxu1 }
 0xc11   :  { %v2641_v57 = vmax.f32 %v2609_v23, 0.0  ;;  %v2612_v7 = vadd.f32 %v3232_v30, %v2886_v55  ;;  %v2603_v35 = vpop.f32.mrb[123].mxu1 }
 0xc12   :  { %v2639_v44 = vmax.f32 %v2601_v25, 0.0  ;;  %v2604_v0 = vadd.f32 %v2886_v55, %v2603_v35 }
 0xc13   :  { %v2642_v59 = vmax.f32 %v2612_v7, 0.0 }
 0xc14   :  { %v2651_v36 = vadd.f32 %v2641_v57, %v2639_v44  ;;  %v2640_v2 = vmax.f32 %v2604_v0, 0.0 }
 0xc16   :  { %v2652_v26 = vadd.f32 %v2642_v59, %v2640_v2 }
 0xc1e   :  { %v3235_v31 = vpop.f32.mrb[124].mxu1 }
 0xc1f   :  { %v2625_v15 = vadd.f32 %v3235_v31, %v2886_v55  ;;  %v2616_v5 = vpop.f32.mrb[125].mxu1 }
 0xc20   :  { %v2617_v43 = vadd.f32 %v2886_v55, %v2616_v5  ;;  %v3236_v52 = vpop.f32.mrb[126].mxu1 }
 0xc21   :  { %v2645_v3 = vmax.f32 %v2625_v15, 0.0  ;;  %v2628_v45 = vadd.f32 %v3236_v52, %v2886_v55  ;;  %v2619_v39 = vpop.f32.mrb[127].mxu1 }
 0xc22   :  { %v2643_v38 = vmax.f32 %v2617_v43, 0.0  ;;  %v2620_v1 = vadd.f32 %v2886_v55, %v2619_v39 }
 0xc23   :  { %v2646_v6 = vmax.f32 %v2628_v45, 0.0 }
 0xc24   :  { %v2653_v46 = vadd.f32 %v2645_v3, %v2643_v38  ;;  %v2644_v17 = vmax.f32 %v2620_v1, 0.0 }
 0xc26   :  { %v2657_v8 = vadd.f32 %v2653_v46, %v2651_v36  ;;  %v2654_v27 = vadd.f32 %v2646_v6, %v2644_v17 }
 0xc28   :  { %v2659_v32 = vadd.f32 %v2657_v8, %v2655_v50  ;;  %v2658_v11 = vadd.f32 %v2654_v27, %v2652_v26 }
 0xc2a   :  { %v2660_v53 = vadd.f32 %v2658_v11, %v2656_v61 }
 0xc2c   :  { %v2661_v12 = vpack.c.bf16 %v2660_v53, %v2659_v32 }
 0xc2e   :  { %3246 = vmatmul.mubr.msk.bf16.vlgmr.msra.gmra.mrb[128].mxu0 %vm644_vm2, %v2661_v12 }
 0xd01   :  { %v2738_v29 = vpop.f32.mrb[128].mxu0 }
 0xd02   :  { %v2739_v58 = vadd.f32 %v2899_v4, %v2738_v29  ;;  %v3247_v21 = vpop.f32.mrb[129].mxu0 }
 0xd03   :  { %v2741_v14 = vpop.f32.mrb[130].mxu0 }
 0xd04   :  { %2745 = vst.msk [vmem:[%s4412_s20] sm:$0xff] %vm130_vm1, %v2739_v58  ;;  %v2742_v55 = vadd.f32 %v2899_v4, %v2741_v14  ;;  %v3248_v20 = vpop.f32.mrb[131].mxu0 }
 0xd06   :  { %2746 = vst.msk [vmem:[%s4412_s20 + $0x8] sm:$0xff] %vm130_vm1, %v2742_v55 }

</bundles_post_ra>
